<compile_context>
chip_gen: v6e
topology: v6e:2x2x1
jax: 0.10.0
libtpu: 0.0.40
codegen_flags: <defaults>
</compile_context>

<pallas_src>
import functools

import jax
import jax.numpy as jnp
from jax.experimental import pallas as pl
from jax.experimental.pallas import tpu as pltpu


def mlp_kernel(x_ref, w1_ref, b1_ref, w2_ref, b2_ref, w3_ref, b3_ref, o_ref,
               *, groups):
    """One batch tile of Linear->ReLU->Linear->ReLU->Linear(out=1)."""
    # Layer 1: bf16 MXU matmul, f32 accumulate, f32 bias + ReLU epilogue.
    h = jnp.dot(x_ref[...].astype(jnp.bfloat16), w1_ref[...],
                preferred_element_type=jnp.float32)
    h = jnp.maximum(h + b1_ref[...], 0.0)

    # Layer 2: same pattern.
    h = jnp.dot(h.astype(jnp.bfloat16), w2_ref[...],
                preferred_element_type=jnp.float32)
    h = jnp.maximum(h + b2_ref[...], 0.0)

    # Layer 3 (out_dim == 1): VPU multiply + lane reduction instead of a
    # degenerate N=1 MXU matmul.  The batch tile is split on a sublane-tile
    # boundary (groups * 128 == TILE_B) so the reduced result is a lane-dense
    # (groups, 128) slab -> full-width output store instead of a masked
    # (TILE_B, 1) column store.
    hw = h * w3_ref[...]                              # (TILE_B, h2) f32
    hw = hw.reshape(groups, 128, hw.shape[-1])        # layout-free split
    out = jnp.sum(hw, axis=-1) + b3_ref[...]          # (groups, 128) f32
    o_ref[...] = out[None].astype(o_ref.dtype)        # block (1, groups, 128)


def _round_up(v, m):
    return ((v + m - 1) // m) * m


def _vmem_tile_cap(in_dim, h1, h2, budget_bytes=24 << 20):
    """Largest batch tile (multiple of 128) that keeps the per-step VMEM
    footprint (double-buffered x/out tiles + f32 hidden activations + the
    default-double-buffered resident weights) under a conservative budget."""
    resident = 2 * ((in_dim * h1 + h1 * h2) * 2 + (h1 + 2 * h2 + 1) * 4)
    per_row = 2 * in_dim * 4 + (h1 + h2) * 4 + 2 * 4
    avail = max(budget_bytes - resident, 128 * per_row)
    return max(128, (avail // per_row) // 128 * 128)


def _pick_batch_tile(padded_batch, cap):
    """Largest 128-multiple tile <= cap that divides padded_batch exactly,
    preferring tiles that leave >= 2 grid steps (v7x megacore / pipelining)."""
    cap = max(128, min(cap, padded_batch))
    candidates = [t for t in range(128, cap + 1, 128) if padded_batch % t == 0]
    multi_step = [t for t in candidates if padded_batch // t >= 2]
    pool = multi_step or candidates
    return max(pool)


def dnn_forward(x, params, *, tile_b=1024):
    """Fused 3-layer MLP forward with a batch grid; weights stay VMEM-resident."""
    (w1, b1), (w2, b2), (w3, b3) = params
    batch, in_dim = x.shape
    h1 = w1.shape[1]
    h2 = w2.shape[1]
    out_dim = w3.shape[1]
    assert out_dim == 1, "kernel specializes the 1-wide output layer"

    # bf16 weights for the MXU (halves resident weight VMEM + DMA bytes);
    # the final-layer row and all biases stay f32 for the f32 VPU epilogue.
    w1_bf = w1.astype(jnp.bfloat16)
    w2_bf = w2.astype(jnp.bfloat16)
    w3_row = jnp.reshape(w3, (1, h2))          # (h2, 1) -> (1, h2), wrapper-side

    # Batch tiling: 128-aligned (lane-dense output slab), exact divisor of the
    # 128-rounded batch (no jnp.pad copy of x when batch % 128 == 0), capped
    # by user tile_b and a VMEM budget, >= 2 grid steps when possible.
    padded_batch = _round_up(batch, 128)
    tile = _pick_batch_tile(padded_batch,
                            min(tile_b, _vmem_tile_cap(in_dim, h1, h2)))
    groups = tile // 128
    num_tiles = padded_batch // tile
    if padded_batch != batch:
        x = jnp.pad(x, ((0, padded_batch - batch), (0, 0)))

    flops = 2 * padded_batch * (in_dim * h1 + h1 * h2 + h2 * out_dim)
    bytes_accessed = (
        padded_batch * in_dim * x.dtype.itemsize   # activations in
        + in_dim * h1 * 2 + h1 * h2 * 2            # bf16 weights
        + (h1 + h2 + h2 + out_dim) * 4             # biases + w3 row (f32)
        + padded_batch * 4                         # output slab
    )

    kernel = functools.partial(mlp_kernel, groups=groups)

    out = pl.pallas_call(
        kernel,
        out_shape=jax.ShapeDtypeStruct((num_tiles, groups, 128), x.dtype),
        grid_spec=pltpu.PrefetchScalarGridSpec(
            num_scalar_prefetch=0,
            grid=(num_tiles,),
            in_specs=[
                # batch-tiled activation input (double-buffered by BlockSpec)
                pl.BlockSpec((tile, in_dim), lambda i: (i, 0)),
                # weights / biases: constant block index -> VMEM-resident.
                # (On v7x at real module dims: pipeline_mode=pl.Buffered(1).)
                pl.BlockSpec((in_dim, h1), lambda i: (0, 0)),
                pl.BlockSpec((1, h1), lambda i: (0, 0)),
                pl.BlockSpec((h1, h2), lambda i: (0, 0)),
                pl.BlockSpec((1, h2), lambda i: (0, 0)),
                pl.BlockSpec((1, h2), lambda i: (0, 0)),
                pl.BlockSpec((1, out_dim), lambda i: (0, 0)),
            ],
            out_specs=pl.BlockSpec((1, groups, 128), lambda i: (i, 0, 0)),
        ),
        compiler_params=pltpu.CompilerParams(
            dimension_semantics=("parallel",),
        ),
        cost_estimate=pl.CostEstimate(
            flops=flops, transcendentals=0, bytes_accessed=bytes_accessed),
    )(x, w1_bf, b1, w2_bf, b2, w3_row, b3)

    # (num_tiles, groups, 128) row-major == batch order; back to (batch, 1).
    return out.reshape(padded_batch, 1)[:batch]


def init_linear(key, in_dim, out_dim, dtype=jnp.float32):
    """PyTorch-style default init: U(-1/sqrt(in), 1/sqrt(in)).

    Returns W already transposed to (in_dim, out_dim), bias as (1, out_dim)."""
    kw, kb = jax.random.split(key)
    bound = 1.0 / jnp.sqrt(jnp.asarray(in_dim, dtype))
    w = jax.random.uniform(kw, (in_dim, out_dim), dtype, -bound, bound)
    b = jax.random.uniform(kb, (1, out_dim), dtype, -bound, bound)
    return w, b


def reference_forward(x, params):
    """Pure-JAX reference mirroring the kernel's numerics (bf16 matmul inputs,
    f32 accumulation, f32 epilogue, final multiply+reduce)."""
    (w1, b1), (w2, b2), (w3, b3) = params
    h = jnp.dot(x.astype(jnp.bfloat16), w1.astype(jnp.bfloat16),
                preferred_element_type=jnp.float32)
    h = jnp.maximum(h + b1, 0.0)
    h = jnp.dot(h.astype(jnp.bfloat16), w2.astype(jnp.bfloat16),
                preferred_element_type=jnp.float32)
    h = jnp.maximum(h + b2, 0.0)
    return jnp.sum(h * jnp.reshape(w3, (1, -1)), axis=-1, keepdims=True) + b3


if __name__ == "__main__":
    # Small shapes, proportional to the module (3000 -> 1500 -> 500 -> 1).
    batch, input_dim, hidden1_dim, hidden2_dim, output_dim = 512, 256, 256, 128, 1

    key = jax.random.PRNGKey(0)
    kx, k1, k2, k3 = jax.random.split(key, 4)

    x = jax.random.normal(kx, (batch, input_dim), dtype=jnp.float32)
    params = (
        init_linear(k1, input_dim, hidden1_dim),
        init_linear(k2, hidden1_dim, hidden2_dim),
        init_linear(k3, hidden2_dim, output_dim),
    )

    y = dnn_forward(x, params, tile_b=1024)   # picks tile=256 -> 2 grid steps
    y = jax.block_until_ready(y)

    y_ref = reference_forward(x, params)
    assert y.shape == (batch, output_dim)
    # bf16 MXU inputs -> relaxed tolerance vs the (identically-cast) reference.
    assert jnp.allclose(y, y_ref, atol=2e-2, rtol=2e-2), "mismatch vs reference"

    print("KERNEL_OK")
</pallas_src>

<mosaic_0001>
module attributes {stable_mosaic.version = 11 : i64} {
  func.func @mlp_kernel(%arg0: i32, %arg1: memref<256x256xf32, #tpu.memory_space<vmem>>, %arg2: memref<256x256xbf16, #tpu.memory_space<vmem>>, %arg3: memref<1x256xf32, #tpu.memory_space<vmem>>, %arg4: memref<256x128xbf16, #tpu.memory_space<vmem>>, %arg5: memref<1x128xf32, #tpu.memory_space<vmem>>, %arg6: memref<1x128xf32, #tpu.memory_space<vmem>>, %arg7: memref<1x1xf32, #tpu.memory_space<vmem>>, %arg8: memref<1x2x128xf32, #tpu.memory_space<vmem>>) attributes {dimension_semantics = [#tpu.dimension_semantics<parallel>], iteration_bounds = array<i64: 2>, scalar_prefetch = 0 : i64, scratch_operands = 0 : i64, tpu.core_type = #tpu.core_type<tc>, window_params = [{transform_indices = @transform_0, window_bounds = array<i64: 256, 256>}, {pipeline_mode = #tpu.pipeline_mode<synchronous>, transform_indices = @transform_1, window_bounds = array<i64: 256, 256>}, {pipeline_mode = #tpu.pipeline_mode<synchronous>, transform_indices = @transform_2, window_bounds = array<i64: 1, 256>}, {pipeline_mode = #tpu.pipeline_mode<synchronous>, transform_indices = @transform_3, window_bounds = array<i64: 256, 128>}, {pipeline_mode = #tpu.pipeline_mode<synchronous>, transform_indices = @transform_4, window_bounds = array<i64: 1, 128>}, {pipeline_mode = #tpu.pipeline_mode<synchronous>, transform_indices = @transform_5, window_bounds = array<i64: 1, 128>}, {pipeline_mode = #tpu.pipeline_mode<synchronous>, transform_indices = @transform_6, window_bounds = array<i64: 1, 1>}, {transform_indices = @transform_7, window_bounds = array<i64: 1, 2, 128>}]} {
    %c0 = arith.constant 0 : index
    %c0_0 = arith.constant 0 : index
    %0 = vector.load %arg1[%c0, %c0_0] : memref<256x256xf32, #tpu.memory_space<vmem>>, vector<256x256xf32>
    %1 = arith.truncf %0 : vector<256x256xf32> to vector<256x256xbf16>
    %c0_1 = arith.constant 0 : index
    %c0_2 = arith.constant 0 : index
    %2 = vector.load %arg2[%c0_1, %c0_2] : memref<256x256xbf16, #tpu.memory_space<vmem>>, vector<256x256xbf16>
    %cst = arith.constant dense<0.000000e+00> : vector<256x256xf32>
    %3 = tpu.matmul %1, %2, %cst {dimension_numbers = #tpu.dot_dimension_numbers<[1], [0], [0], [1], [0, 0, 1, 1], [], []>} : vector<256x256xbf16>, vector<256x256xbf16>, vector<256x256xf32> -> vector<256x256xf32>
    %c0_3 = arith.constant 0 : index
    %c0_4 = arith.constant 0 : index
    %4 = vector.load %arg3[%c0_3, %c0_4] : memref<1x256xf32, #tpu.memory_space<vmem>>, vector<1x256xf32>
    %5 = vector.broadcast %4 : vector<1x256xf32> to vector<256x256xf32>
    %6 = arith.addf %3, %5 : vector<256x256xf32>
    %cst_5 = arith.constant 0.000000e+00 : f32
    %7 = vector.broadcast %cst_5 : f32 to vector<256x256xf32>
    %8 = arith.maximumf %6, %7 : vector<256x256xf32>
    %9 = arith.truncf %8 : vector<256x256xf32> to vector<256x256xbf16>
    %c0_6 = arith.constant 0 : index
    %c0_7 = arith.constant 0 : index
    %10 = vector.load %arg4[%c0_6, %c0_7] : memref<256x128xbf16, #tpu.memory_space<vmem>>, vector<256x128xbf16>
    %cst_8 = arith.constant dense<0.000000e+00> : vector<256x128xf32>
    %11 = tpu.matmul %9, %10, %cst_8 {dimension_numbers = #tpu.dot_dimension_numbers<[1], [0], [0], [1], [0, 0, 1, 1], [], []>} : vector<256x256xbf16>, vector<256x128xbf16>, vector<256x128xf32> -> vector<256x128xf32>
    %c0_9 = arith.constant 0 : index
    %c0_10 = arith.constant 0 : index
    %12 = vector.load %arg5[%c0_9, %c0_10] : memref<1x128xf32, #tpu.memory_space<vmem>>, vector<1x128xf32>
    %13 = vector.broadcast %12 : vector<1x128xf32> to vector<256x128xf32>
    %14 = arith.addf %11, %13 : vector<256x128xf32>
    %cst_11 = arith.constant 0.000000e+00 : f32
    %15 = vector.broadcast %cst_11 : f32 to vector<256x128xf32>
    %16 = arith.maximumf %14, %15 : vector<256x128xf32>
    %c0_12 = arith.constant 0 : index
    %c0_13 = arith.constant 0 : index
    %17 = vector.load %arg6[%c0_12, %c0_13] : memref<1x128xf32, #tpu.memory_space<vmem>>, vector<1x128xf32>
    %18 = vector.broadcast %17 : vector<1x128xf32> to vector<256x128xf32>
    %19 = arith.mulf %16, %18 : vector<256x128xf32>
    %20 = vector.shape_cast %19 : vector<256x128xf32> to vector<2x128x128xf32>
    %cst_14 = arith.constant dense<0.000000e+00> : vector<2x128xf32>
    %21 = vector.multi_reduction <add>, %20, %cst_14 [2] : vector<2x128x128xf32> to vector<2x128xf32>
    %c0_15 = arith.constant 0 : index
    %c0_16 = arith.constant 0 : index
    %22 = vector.load %arg7[%c0_15, %c0_16] : memref<1x1xf32, #tpu.memory_space<vmem>>, vector<1x1xf32>
    %23 = vector.broadcast %22 : vector<1x1xf32> to vector<2x128xf32>
    %24 = arith.addf %21, %23 : vector<2x128xf32>
    %25 = vector.shape_cast %24 : vector<2x128xf32> to vector<1x2x128xf32>
    %c0_17 = arith.constant 0 : index
    %c0_18 = arith.constant 0 : index
    %c0_19 = arith.constant 0 : index
    %26 = vector.load %arg8[%c0_17, %c0_18, %c0_19] : memref<1x2x128xf32, #tpu.memory_space<vmem>>, vector<1x2x128xf32>
    tpu.vector_store %arg8[%c0_17, %c0_18, %c0_19], %25 {strides = array<i32>} : memref<1x2x128xf32, #tpu.memory_space<vmem>>, vector<1x2x128xf32>,
    return
  }
  func.func @transform_0(%arg0: i32) -> (i32, i32) {
    %c0_i32 = arith.constant 0 : i32
    %c0_i32_0 = arith.constant 0 : i32
    return %arg0, %c0_i32 : i32, i32
  }
  func.func @transform_1(%arg0: i32) -> (i32, i32) {
    %c0_i32 = arith.constant 0 : i32
    %c0_i32_0 = arith.constant 0 : i32
    %c0_i32_1 = arith.constant 0 : i32
    return %c0_i32, %c0_i32_0 : i32, i32
  }
  func.func @transform_2(%arg0: i32) -> (i32, i32) {
    %c0_i32 = arith.constant 0 : i32
    %c0_i32_0 = arith.constant 0 : i32
    %c0_i32_1 = arith.constant 0 : i32
    return %c0_i32, %c0_i32_0 : i32, i32
  }
  func.func @transform_3(%arg0: i32) -> (i32, i32) {
    %c0_i32 = arith.constant 0 : i32
    %c0_i32_0 = arith.constant 0 : i32
    %c0_i32_1 = arith.constant 0 : i32
    return %c0_i32, %c0_i32_0 : i32, i32
  }
  func.func @transform_4(%arg0: i32) -> (i32, i32) {
    %c0_i32 = arith.constant 0 : i32
    %c0_i32_0 = arith.constant 0 : i32
    %c0_i32_1 = arith.constant 0 : i32
    return %c0_i32, %c0_i32_0 : i32, i32
  }
  func.func @transform_5(%arg0: i32) -> (i32, i32) {
    %c0_i32 = arith.constant 0 : i32
    %c0_i32_0 = arith.constant 0 : i32
    %c0_i32_1 = arith.constant 0 : i32
    return %c0_i32, %c0_i32_0 : i32, i32
  }
  func.func @transform_6(%arg0: i32) -> (i32, i32) {
    %c0_i32 = arith.constant 0 : i32
    %c0_i32_0 = arith.constant 0 : i32
    %c0_i32_1 = arith.constant 0 : i32
    return %c0_i32, %c0_i32_0 : i32, i32
  }
  func.func @transform_7(%arg0: i32) -> (i32, i32, i32) {
    %c0_i32 = arith.constant 0 : i32
    %c0_i32_0 = arith.constant 0 : i32
    %c0_i32_1 = arith.constant 0 : i32
    return %arg0, %c0_i32, %c0_i32_0 : i32, i32, i32
  }
}

</mosaic_0001>

<bundles_post_ra>
// kernel: tpu_custom_call.1
= control target key start
LH: loop header
LB: loop body
LE: loop exit
PB: predicated region body
PF: predicated region fallthrough
CT: control target
= control target key end

     0   :  { %s2805_s0 = inlined_call_operand.hbm [shape: f32[512,256], index: 0, kind: input, shape index: {}]   ;;  %s2806_s1 = inlined_call_operand.hbm [shape: bf16[256,256], index: 1, kind: input, shape index: {}]   ;;  %s2807_s2 = inlined_call_operand.vmem [shape: f32[1,256], index: 2, kind: input, shape index: {}]   ;;  %s2808_s3 = inlined_call_operand.hbm [shape: bf16[256,128], index: 3, kind: input, shape index: {}]   ;;  %s2809_s4 = inlined_call_operand.vmem [shape: f32[1,128], index: 4, kind: input, shape index: {}]   ;;  %s2810_s5 = inlined_call_operand.vmem [shape: f32[1,128], index: 5, kind: input, shape index: {}]   ;;  %s2811_s6 = inlined_call_operand.<no memory space> [shape: f32[1,1], index: 6, kind: input, shape index: {}]   ;;  %s2812_s7 = inlined_call_operand.hbm [shape: f32[2,2,128], index: 7, kind: output, shape index: {}]  }
   0x1   :  { %v12_v0 = vstv %s2811_s6 }
   0x2   :  { %13 = vst [vmem:[#allocation2] sm:$0x1] %v12_v0 }
   0x3   :  { %14 = vsyncpa [#allocation4], 0 }
   0x4   :  { %16 = vsyncpa [#allocation4 + $0x1], 0 }
   0x5   :  { %17 = vsyncpa [#allocation7], 0 }
   0x6   :  { %18 = vsyncpa [#allocation5], 0 }
   0x7   :  { %20 = vsyncpa [#allocation5 + $0x1], 0  ;;  %s2248_s26 = smov 0   ;;  %s2250_s27 = smov 0  }
   0x8   :  { %s2252_s28 = smov 0   ;;  %s2254_s29 = smov 0  }
   0x9 LB: > { %s2269_s6 = sadd.s32 4294967295, %s2192_s29   ;;  %s1722_s30 = sadd.s32 4294967294, %s2192_s29   ;;  %s2192_s29 = sphi %s2254_s29, %s2834_s29   ;;  %s2188_s28 = sphi %s2252_s28, %s2833_s28   ;;  %s2184_s27 = sphi %s2250_s27, %s2832_s27   ;;  %s2180_s26 = sphi %s2248_s26, %s2831_s26  }
   0xa   : > { %p46_p0 = scmp.ne.s32.totalorder %s2184_s27, %s2180_s26  ;;  %p2813_p1 = scmp.eq.s32.totalorder %s2269_s6, 0 }
   0xb   : > { %p202_p3 = scmp.eq.s32.totalorder %s1722_s30, 1  ;;  %p1723_p5 = scmp.ge.s32.totalorder %s2192_s29, 1 }
   0xc   : > { %p2278_p4 = por %p2813_p1, %p46_p0  ;;  %p209_p7 = scmp.lt.s32.totalorder %s2192_s29, 3 }
   0xd   : > { %p2283_p6 = por %p202_p3, %p46_p0  ;;  %s2194_s11 = smov [#allocation6]  }
   0xe   : > { %s2817_s8 = scalar_select %p2278_p4, 1, 0 }
   0xf   : > { %s2818_s9 = scalar_select %p2283_p6, 1, 0 }
  0x10   : > { %p2288_p8 = pnand %p1723_p5, %p209_p7  ;;  %s221_s12 = sshll.u32 %s2194_s11, 4  ;;  %s222_s12 = int_to_ptr.vmem [resolvable:$true] %s221_s12 }
  0x11   : > { %s2195_s14 = smov [#allocation8]   ;;  %s2055_s16 = scalar_lea.vmem %s222_s12, 4096 }
  0x12   : > { %s2819_s10 = scalar_select %p2288_p8, 1, 0 }
  0x13   : > { %p1917_p9 = pneg %p2288_p8  ;;  %s237_s15 = sshll.u32 %s2195_s14, 4  ;;  %s238_s15 = int_to_ptr.vmem [resolvable:$true] %s237_s15 }
  0x14   : > { %p2056_p13 = scmp.ne.s32.totalorder %s222_s12, %s2055_s16  ;;  %p2063_p5 = scmp.lt.s32.totalorder %s222_s12, %s222_s12 }
  0x15   : > { %p2297_p11 = pnand %p1917_p9, %p2813_p1  ;;  %p2064_p7 = scmp.lt.s32.totalorder %s2055_s16, %s2055_s16 }
  0x17   : > { %p2046_p12 = pneg %p2297_p11  ;;  %p2065_p10 = por %p2064_p7, %p2063_p5 }
  0x19   : > { %p2058_p0 = pnand %p2056_p13, %p2046_p12 }
  0x1b   : > { %p2059_p3 = pneg %p2058_p0 }
  0x1d   : > { %p2066_p9 = pnand %p2065_p10, %p2059_p3 }
  0x1f   : > { %2069 = shalt.err (!%p2066_p9)
}
  0x20   : > { %s2196_s17 = smov 128   ;;  %s2197_s18 = smov 8  }
  0x21   : > { %1920 = dma.hbm_to_vmem [thread:$0]  (!%p2297_p11), %s2806_s1, 4096, %s222_s12, [#allocation7], %s2196_s17, %s2196_s17, %s2197_s18  }
  0x22   : > { %s2081_s21 = scalar_lea.vmem %s238_s15, 2048  ;;  %p2089_p2 = scmp.lt.s32.totalorder %s238_s15, %s238_s15 }
  0x23   : > { %p2082_p1 = scmp.ne.s32.totalorder %s238_s15, %s2081_s21  ;;  %p2090_p6 = scmp.lt.s32.totalorder %s2081_s21, %s2081_s21 }
  0x25   : > { %p2084_p13 = pnand %p2082_p1, %p2046_p12  ;;  %p2091_p5 = por %p2090_p6, %p2089_p2 }
  0x27   : > { %p2085_p0 = pneg %p2084_p13 }
  0x29   : > { %p2092_p10 = pnand %p2091_p5, %p2085_p0 }
  0x2b   : > { %2095 = shalt.err (!%p2092_p10)
}
  0x2c   : > { %s2198_s22 = smov 64   ;;  %s2199_s23 = smov 4  }
  0x2d   : > { %1923 = dma.hbm_to_vmem [thread:$0]  (!%p2297_p11), %s2808_s3, 2048, %s238_s15, [#allocation7], %s2198_s22, %s2198_s22, %s2199_s23  }
  0x2e   : > { %s2320_s30 = sadd.s32 1, %s2192_s29   ;;  %s33_s12 = sadd.s32 1, %s2188_s28 }
  0x2f   : > { %s30_s11 = ssub.s32 %s2192_s29, %s2320_s30  ;;  %p40_p2 = scmp.ne.s32.totalorder %s2188_s28, %s2184_s27 }
  0x30   : > { %p31_p1 = scmp.eq.s32.totalorder %s30_s11, 0  ;;  %p41_p6 = scmp.eq.s32.totalorder %s2192_s29, 0 }
  0x31   : > { %p2821_p3 = scmp.eq.s32.totalorder %s2269_s6, 1  ;;  %p1934_p9 = scmp.lt.s32.totalorder %s2192_s29, 2 }
  0x32   : > { %s2329_s14 = scalar_select %p31_p1, %s2188_s28, %s33_s12  }
  0x33   : > { %p42_p12 = por %p41_p6, %p40_p2  ;;  %p2333_p7 = por %p2821_p3, %p40_p2 }
  0x34   : > { %s260_s13 = sand.u32 1, %s2188_s28   ;;  %s1792_s15 = sshll.u32 %s2192_s29, 13 }
  0x35   : > { %s2822_s16 = scalar_select %p2333_p7, 1, 0 }
  0x36   : > { %s1727_s17 = sshll.u32 %s260_s13, 9  ;;  %s2343_s20 = scalar_lea.hbm %s2805_s0, %s1792_s15 }
  0x37   : > { %s264_s21 = scalar_lea.vmem [#allocation3], %s1727_s17  ;;  %p2347_p11 = pnand %p1934_p9, %p42_p12 }
  0x38   : > { %s272_s22 = sshll.u32 %s264_s21, 4  ;;  %s2351_s24 = scalar_lea.sflag [#allocation4], %s260_s13  ;;  %s2345_s22 = int_to_ptr.vmem [resolvable:$true] %s272_s22 }
  0x39   : > { %s2096_s25 = scalar_lea.hbm %s2343_s20, 8192  ;;  %p2098_p0 = pneg %p2347_p11 }
  0x3a   : > { %p2097_p13 = scmp.ne.s32.totalorder %s2343_s20, %s2096_s25  ;;  %s2101_s17 = scalar_lea.hbm %s2805_s0, 16384 }
  0x3b   : > { %p2102_p1 = scmp.lt.s32.totalorder %s2343_s20, %s2805_s0  ;;  %p2103_p2 = scmp.lt.s32.totalorder %s2101_s17, %s2096_s25 }
  0x3c   : > { %p2099_p5 = pnand %p2098_p0, %p2097_p13 }
  0x3d   : > { %p2104_p6 = por %p2103_p2, %p2102_p1 }
  0x3e   : > { %p2100_p10 = pneg %p2099_p5 }
  0x40   : > { %p2105_p12 = pnand %p2104_p6, %p2100_p10 }
  0x42   : > { %2108 = shalt.err (!%p2105_p12)
}
  0x43   : > { %s2109_s13 = scalar_lea.vmem %s2345_s22, 8192  ;;  %s2200_s19 = smov [#allocation3]  }
  0x44   : > { %p2110_p3 = scmp.ne.s32.totalorder %s2345_s22, %s2109_s13  ;;  %s2114_s21 = sshll.u32 %s2200_s19, 4  ;;  %s2115_s21 = int_to_ptr.vmem [resolvable:$false] %s2114_s21 }
  0x45   : > { %s2116_s11 = scalar_lea.vmem %s2115_s21, 16384  ;;  %p2117_p5 = scmp.lt.s32.totalorder %s2345_s22, %s2115_s21 }
  0x46   : > { %p2112_p9 = pnand %p2110_p3, %p2098_p0  ;;  %p2118_p7 = scmp.lt.s32.totalorder %s2116_s11, %s2109_s13 }
  0x48   : > { %p2113_p13 = pneg %p2112_p9  ;;  %p2119_p4 = por %p2118_p7, %p2117_p5 }
  0x4a   : > { %p2120_p8 = pnand %p2119_p4, %p2113_p13 }
  0x4c   : > { %2123 = shalt.err (!%p2120_p8)
}
  0x4d   : > { %s2201_s25 = smov 256   ;;  %s2202_s12 = smov 16  }
  0x4e   : > { %1927 = dma.hbm_to_vmem [thread:$0]  (!%p2347_p11), %s2343_s20, 8192, %s2345_s22, %s2351_s24, %s2201_s25, %s2201_s25, %s2202_s12  }
  0x4f   : > { %p2824_p0 = scmp.ne.s32.totalorder %s2819_s10, 0 }
  0x50   : > { %s2375_s17 = sand.u32 (!%p2824_p0), 1, %s2184_s27   ;;  %p2825_p4 = scmp.ne.s32.totalorder (!%p2824_p0), %s2817_s8, 0 }
  0x51   : > { %284 = sbr.rel (%p2824_p0) target bundleno = 845 (0x34d), region = 48  ;;  %s1732_s15 = sshll.u32 (!%p2824_p0), %s2375_s17, 9 }
  0x52   : > { %s287_s18 = scalar_lea.sflag (!%p2824_p0), [#allocation4], %s2375_s17  ;;  %s2379_s13 = scalar_lea.vmem (!%p2824_p0), [#allocation3], %s1732_s15 }
  0x56   : > { %2167 = dma.done.wait (%p2825_p4), %s287_s18, 8192  }
  0x57   : > { %2169 = vsyncadd (%p2825_p4), %s287_s18, 4294959104  ;;  %p2826_p8 = scmp.eq.s32.totalorder %s2269_s6, 0 }
  0x59   : > { %2171 = dma.done.wait (%p2826_p8), [#allocation7], 6144   ;;  %p2827_p7 = pmov %p2826_p8 }
  0x5a   : > { %v1980_v1 = vld [vmem:[#allocation6 + $0x74] ss:$8 sps:$4 sm:$0xff]   ;;  %v1982_v2 = vld [vmem:[#allocation6 + $0x70] ss:$8 sps:$4 sm:$0xff]   ;;  %v1983_v3 = vld [vmem:[#allocation6 + $0x64] ss:$8 sps:$4 sm:$0xff]  }
  0x5b   : > { %2173 = vsyncadd (%p2827_p7), [#allocation7], 4294961152  ;;  %631 = vmatprep.subr.bf16.mxu0 %v1980_v1  ;;  %v1985_v4 = vld [vmem:[#allocation6 + $0x60] ss:$8 sps:$4 sm:$0xff]   ;;  %v1986_v5 = vld [vmem:[#allocation6 + $0x54] ss:$8 sps:$4 sm:$0xff]  }
  0x5c   : > { %632 = vmatpush1.bf16.msra.mxu0 %v1982_v2  ;;  %v1988_v6 = vld [vmem:[#allocation6 + $0x50] ss:$8 sps:$4 sm:$0xff]   ;;  %v1989_v7 = vld [vmem:[#allocation6 + $0x44] ss:$8 sps:$4 sm:$0xff]   ;;  %v1991_v8 = vld [vmem:[#allocation6 + $0x40] ss:$8 sps:$4 sm:$0xff]  }
  0x5d   : > { %633 = vmatprep.subr.bf16.mxu0 %v1983_v3  ;;  %v1992_v9 = vld [vmem:[#allocation6 + $0x34] ss:$8 sps:$4 sm:$0xff]   ;;  %v1994_v10 = vld [vmem:[#allocation6 + $0x30] ss:$8 sps:$4 sm:$0xff]   ;;  %v1995_v11 = vld [vmem:[#allocation6 + $0x24] ss:$8 sps:$4 sm:$0xff]  }
  0x5e   : > { %v1997_v12 = vld [vmem:[#allocation6 + $0x20] ss:$8 sps:$4 sm:$0xff]   ;;  %v1998_v13 = vld [vmem:[#allocation6 + $0x14] ss:$8 sps:$4 sm:$0xff]   ;;  %v2000_v17 = vld [vmem:[#allocation6 + $0x10] ss:$8 sps:$4 sm:$0xff]  }
  0x5f   : > { %v332_v14 = vld [vmem:[%s2379_s13 + $0x8] sm:$0xff]  ;;  %v334_v15 = vld [vmem:[%s2379_s13 + $0x18] sm:$0xff]  ;;  %v2030_v37 = vld [vmem:[#allocation8 + $0x70] sm:$0xff]   ;;  %vm1436_vm0 = vcmask 130112   ;;  %vm1443_vm1 = vcmask 195712   ;;  %vm1450_vm2 = vcmask 261312  }
  0x60   : > { %634 = vmatpush1.bf16.msra.mxu0 %v1985_v4  ;;  %v396_v16 = vpack.c.bf16 %v334_v15, %v332_v14  ;;  %v2001_v18 = vld [vmem:[#allocation6 + $0x4] ss:$8 sps:$4 sm:$0xff]   ;;  %v2003_v19 = vld [vmem:[#allocation6] ss:$8 sps:$4 sm:$0xff]   ;;  %v2004_v20 = vld [vmem:[#allocation6 + $0xf4] ss:$8 sps:$4 sm:$0xff]  }
  0x61   : > { %635 = vmatprep.subr.bf16.mxu0 %v1986_v5  ;;  %v2006_v21 = vld [vmem:[#allocation6 + $0xf0] ss:$8 sps:$4 sm:$0xff]   ;;  %v2007_v22 = vld [vmem:[#allocation6 + $0xe4] ss:$8 sps:$4 sm:$0xff]   ;;  %v2009_v23 = vld [vmem:[#allocation6 + $0xe0] ss:$8 sps:$4 sm:$0xff]  }
  0x62   : > { %663 = vmatprep.mubr.bf16.mxu0 %v396_v16  ;;  %v2010_v24 = vld [vmem:[#allocation6 + $0xd4] ss:$8 sps:$4 sm:$0xff]   ;;  %v2012_v25 = vld [vmem:[#allocation6 + $0xd0] ss:$8 sps:$4 sm:$0xff]   ;;  %v2013_v26 = vld [vmem:[#allocation6 + $0xc4] ss:$8 sps:$4 sm:$0xff]  }
  0x63   : > { %v2015_v27 = vld [vmem:[#allocation6 + $0xc0] ss:$8 sps:$4 sm:$0xff]   ;;  %v2016_v28 = vld [vmem:[#allocation6 + $0xb4] ss:$8 sps:$4 sm:$0xff]   ;;  %v2018_v29 = vld [vmem:[#allocation6 + $0xb0] ss:$8 sps:$4 sm:$0xff]  }
  0x64   : > { %636 = vmatpush1.bf16.msra.mxu0 %v1988_v6  ;;  %v2019_v30 = vld [vmem:[#allocation6 + $0xa4] ss:$8 sps:$4 sm:$0xff]   ;;  %v2021_v31 = vld [vmem:[#allocation6 + $0xa0] ss:$8 sps:$4 sm:$0xff]   ;;  %v2022_v32 = vld [vmem:[#allocation6 + $0x94] ss:$8 sps:$4 sm:$0xff]  }
  0x65   : > { %637 = vmatprep.subr.bf16.mxu0 %v1989_v7  ;;  %v2024_v33 = vld [vmem:[#allocation6 + $0x90] ss:$8 sps:$4 sm:$0xff]   ;;  %v2025_v34 = vld [vmem:[#allocation6 + $0x84] ss:$8 sps:$4 sm:$0xff]   ;;  %v2027_v38 = vld [vmem:[#allocation6 + $0x80] ss:$8 sps:$4 sm:$0xff]  }
  0x66   : > { %v2028_v35 = vld [vmem:[#allocation8 + $0x78] sm:$0xff]   ;;  %v331_v39 = vld [vmem:[%s2379_s13] sm:$0xff]  ;;  %v333_v40 = vld [vmem:[%s2379_s13 + $0x10] sm:$0xff]  ;;  %vm1457_vm3 = vcmask 326912   ;;  %vm1464_vm4 = vcmask 392512   ;;  %vm1471_vm5 = vcmask 458112  }
  0x67   : > { %v2029_v36 = vld [vmem:[#allocation8 + $0x38] sm:$0xff]   ;;  %v336_v41 = vld [vmem:[%s2379_s13 + $0x28] sm:$0xff]  ;;  %1793 = vmatprep.subr.bf16.mxu1 %v2028_v35  ;;  %v2031_v43 = vld [vmem:[#allocation8 + $0x30] sm:$0xff]   ;;  %v395_v44 = vpack.c.bf16 %v333_v40, %v331_v39  ;;  %vm1478_vm6 = vcmask 523712   ;;  %vm1485_vm7 = vcmask 589312   ;;  %vm1492_vm8 = vcmask 654912  }
  0x68   : > { %638 = vmatpush1.bf16.msra.mxu0 %v1991_v8  ;;  %v338_v42 = vld [vmem:[%s2379_s13 + $0x38] sm:$0xff]  ;;  %1794 = vmatpush3.bf16.msra.mxu1 %v2029_v36  ;;  %v2032_v45 = vld [vmem:[#allocation8 + $0x68] sm:$0xff]   ;;  %v2034_v48 = vld [vmem:[#allocation8 + $0x60] sm:$0xff]   ;;  %vm1499_vm9 = vcmask 720512   ;;  %vm1506_vm10 = vcmask 786112   ;;  %vm1513_vm11 = vcmask 851712  }
  0x69   : > { %639 = vmatprep.subr.bf16.mxu0 %v1992_v9  ;;  %1795 = vmatprep.subr.bf16.mxu1 %v2030_v37  ;;  %v398_v46 = vpack.c.bf16 %v338_v42, %v336_v41  ;;  %v2033_v47 = vld [vmem:[#allocation8 + $0x28] sm:$0xff]   ;;  %v335_v49 = vld [vmem:[%s2379_s13 + $0x20] sm:$0xff]  ;;  %v337_v50 = vld [vmem:[%s2379_s13 + $0x30] sm:$0xff]  ;;  %vm1520_vm12 = vcmask 917312   ;;  %s1735_s19 = sshll.u32 %s2375_s17, 1  ;;  %vm1527_vm13 = vcmask 982912  }
  0x6a   : > { %v340_v51 = vld [vmem:[%s2379_s13 + $0x48] sm:$0xff]  ;;  %v342_v52 = vld [vmem:[%s2379_s13 + $0x58] sm:$0xff]  ;;  %v2035_v53 = vld [vmem:[#allocation8 + $0x20] sm:$0xff]   ;;  %v397_v54 = vpack.c.bf16 %v337_v50, %v335_v49  ;;  %vm1534_vm14 = vcmask 1048512   ;;  %s1788_s21 = sshll.u32 %s2269_s6, 5  ;;  %s328_s11 = scalar_lea.vmem [#allocation9], %s1735_s19 }
  0x6b   : > { %v2036_v55 = vld [vmem:[#allocation8 + $0x58] sm:$0xff]   ;;  %v400_v56 = vpack.c.bf16 %v342_v52, %v340_v51  ;;  %v339_v58 = vld [vmem:[%s2379_s13 + $0x40] sm:$0xff]  ;;  %v341_v59 = vld [vmem:[%s2379_s13 + $0x50] sm:$0xff]  ;;  %s1633_s25 = sshll.u32 %s328_s11, 4  ;;  %vm1615_vm15 = vcmask 1041409   ;;  %s2768_s18 = scalar_lea.hbm %s2812_s7, %s1788_s21  ;;  %s1634_s25 = int_to_ptr.vmem [resolvable:$true] %s1633_s25 }
  0x6c   : > { %640 = vmatpush1.bf16.msra.mxu0 %v1994_v10  ;;  %1796 = vmatpush3.bf16.msra.mxu1 %v2031_v43  ;;  %v2037_v57 = vld [vmem:[#allocation8 + $0x18] sm:$0xff]   ;;  %v344_v60 = vld [vmem:[%s2379_s13 + $0x68] sm:$0xff]  ;;  %v399_v62 = vpack.c.bf16 %v341_v59, %v339_v58  ;;  %v343_v0 = vld [vmem:[%s2379_s13 + $0x60] sm:$0xff]  ;;  %s1620_s6 = scalar_lea.sflag [#allocation5], %s2375_s17  ;;  %p2828_p10 = scmp.ne.s32.totalorder %s2822_s16, 0 }
  0x6d   : > { %641 = vmatprep.subr.bf16.mxu0 %v1995_v11  ;;  %1797 = vmatprep.subr.bf16.mxu1 %v2032_v45  ;;  %v346_v61 = vld [vmem:[%s2379_s13 + $0x78] sm:$0xff]  ;;  %v345_v1 = vld [vmem:[%s2379_s13 + $0x70] sm:$0xff]  ;;  %v348_v2 = vld [vmem:[%s2379_s13 + $0x88] sm:$0xff]  ;;  %s2204_s8 = smov [#allocation9]  }
  0x6e   : > { %v402_v63 = vpack.c.bf16 %v346_v61, %v344_v60  ;;  %v350_v3 = vld [vmem:[%s2379_s13 + $0x98] sm:$0xff]  ;;  %v401_v4 = vpack.c.bf16 %v345_v1, %v343_v0  ;;  %v347_v6 = vld [vmem:[%s2379_s13 + $0x80] sm:$0xff]  ;;  %v349_v7 = vld [vmem:[%s2379_s13 + $0x90] sm:$0xff]  ;;  %s2128_s10 = sshll.u32 %s2204_s8, 4  ;;  %s2129_s10 = int_to_ptr.vmem [resolvable:$false] %s2128_s10 }
  0x6f   : > { %v404_v5 = vpack.c.bf16 %v350_v3, %v348_v2  ;;  %v352_v8 = vld [vmem:[%s2379_s13 + $0xa8] sm:$0xff]  ;;  %v354_v9 = vld [vmem:[%s2379_s13 + $0xb8] sm:$0xff]  ;;  %v403_v10 = vpack.c.bf16 %v349_v7, %v347_v6  ;;  %v2038_v36 = vld [vmem:[#allocation8 + $0x50] sm:$0xff]   ;;  %s2130_s20 = scalar_lea.vmem %s2129_s10, 64  ;;  %p2131_p6 = scmp.lt.s32.totalorder %s1634_s25, %s2129_s10 }
  0x70   : > { %642 = vmatpush1.bf16.msra.mxu0 %v1997_v12  ;;  %1798 = vmatpush3.bf16.msra.mxu1 %v2033_v47  ;;  %v406_v11 = vpack.c.bf16 %v354_v9, %v352_v8  ;;  %v351_v12 = vld [vmem:[%s2379_s13 + $0xa0] sm:$0xff]  ;;  %v356_v14 = vld [vmem:[%s2379_s13 + $0xc8] sm:$0xff]  ;;  %v358_v15 = vld [vmem:[%s2379_s13 + $0xd8] sm:$0xff] }
  0x71   : > { %643 = vmatprep.subr.bf16.mxu0 %v1998_v13  ;;  %1799 = vmatprep.subr.bf16.mxu1 %v2034_v48  ;;  %v353_v13 = vld [vmem:[%s2379_s13 + $0xb0] sm:$0xff]  ;;  %v367_v37 = vld [vmem:[%s2379_s13 + $0x120] sm:$0xff]  ;;  %v372_v40 = vld [vmem:[%s2379_s13 + $0x148] sm:$0xff] }
  0x72   : > { %v405_v16 = vpack.c.bf16 %v353_v13, %v351_v12  ;;  %v2039_v39 = vld [vmem:[#allocation8 + $0x10] sm:$0xff]   ;;  %v374_v41 = vld [vmem:[%s2379_s13 + $0x158] sm:$0xff]  ;;  %v2040_v43 = vld [vmem:[#allocation8 + $0x48] sm:$0xff]  }
  0x73   : > { %v2041_v45 = vld [vmem:[#allocation8 + $0x8] sm:$0xff]   ;;  %v371_v47 = vld [vmem:[%s2379_s13 + $0x140] sm:$0xff]  ;;  %v373_v48 = vld [vmem:[%s2379_s13 + $0x150] sm:$0xff] }
  0x74   : > { %644 = vmatpush1.bf16.msra.mxu0 %v2000_v17  ;;  %1800 = vmatpush3.bf16.msra.mxu1 %v2035_v53  ;;  %v408_v17 = vpack.c.bf16 %v358_v15, %v356_v14  ;;  %v2043_v49 = vld [vmem:[#allocation8] sm:$0xff]   ;;  %v376_v50 = vld [vmem:[%s2379_s13 + $0x168] sm:$0xff]  ;;  %v378_v51 = vld [vmem:[%s2379_s13 + $0x178] sm:$0xff]  ;;  %v415_v52 = vpack.c.bf16 %v373_v48, %v371_v47 }
  0x75   : > { %645 = vmatprep.subr.bf16.mxu0 %v2001_v18  ;;  %1801 = vmatprep.subr.bf16.mxu1 %v2036_v55  ;;  %v355_v18 = vld [vmem:[%s2379_s13 + $0xc0] sm:$0xff]  ;;  %v418_v53 = vpack.c.bf16 %v378_v51, %v376_v50  ;;  %v377_v55 = vld [vmem:[%s2379_s13 + $0x170] sm:$0xff] }
  0x76   : > { %v379_v60 = vld [vmem:[%s2379_s13 + $0x180] sm:$0xff]  ;;  %v381_v61 = vld [vmem:[%s2379_s13 + $0x190] sm:$0xff] }
  0x77   : > { %v419_v0 = vpack.c.bf16 %v381_v61, %v379_v60  ;;  %v383_v2 = vld [vmem:[%s2379_s13 + $0x1a0] sm:$0xff]  ;;  %v385_v3 = vld [vmem:[%s2379_s13 + $0x1b0] sm:$0xff] }
  0x78   : > { %646 = vmatpush1.bf16.msra.mxu0 %v2003_v19  ;;  %1802 = vmatpush3.bf16.msra.mxu1 %v2037_v57  ;;  %v357_v19 = vld [vmem:[%s2379_s13 + $0xd0] sm:$0xff]  ;;  %v382_v57 = vld [vmem:[%s2379_s13 + $0x198] sm:$0xff]  ;;  %v421_v6 = vpack.c.bf16 %v385_v3, %v383_v2  ;;  %v387_v8 = vld [vmem:[%s2379_s13 + $0x1c0] sm:$0xff] }
  0x79   : > { %647 = vmatprep.subr.bf16.mxu0 %v2004_v20  ;;  %v360_v20 = vld [vmem:[%s2379_s13 + $0xe8] sm:$0xff]  ;;  %1803 = vmatprep.subr.bf16.mxu1 %v2038_v36  ;;  %v389_v9 = vld [vmem:[%s2379_s13 + $0x1d0] sm:$0xff]  ;;  %v391_v14 = vld [vmem:[%s2379_s13 + $0x1e0] sm:$0xff] }
  0x7a   : > { %v423_v12 = vpack.c.bf16 %v389_v9, %v387_v8  ;;  %v393_v15 = vld [vmem:[%s2379_s13 + $0x1f0] sm:$0xff] }
  0x7c   : > { %648 = vmatpush2.bf16.msra.mxu0 %v2006_v21  ;;  %v362_v21 = vld [vmem:[%s2379_s13 + $0xf8] sm:$0xff]  ;;  %1804 = vmatpush3.bf16.msra.mxu1 %v2039_v39 }
  0x7d   : > { %649 = vmatprep.subr.bf16.mxu0 %v2007_v22  ;;  %v407_v22 = vpack.c.bf16 %v357_v19, %v355_v18  ;;  %1805 = vmatprep.subr.bf16.mxu1 %v2040_v43 }
  0x80   : > { %650 = vmatpush2.bf16.msra.mxu0 %v2009_v23  ;;  %v410_v23 = vpack.c.bf16 %v362_v21, %v360_v20  ;;  %1806 = vmatpush3.bf16.msra.mxu1 %v2041_v45  ;;  %v459_v21 = vld [vmem:[%s2807_s2] sm:$0x3] }
  0x81   : > { %651 = vmatprep.subr.bf16.mxu0 %v2010_v24  ;;  %v359_v24 = vld [vmem:[%s2379_s13 + $0xe0] sm:$0xff] }
  0x84   : > { %652 = vmatpush2.bf16.msra.mxu0 %v2012_v25  ;;  %v361_v25 = vld [vmem:[%s2379_s13 + $0xf0] sm:$0xff] }
  0x85   : > { %653 = vmatprep.subr.bf16.mxu0 %v2013_v26  ;;  %v364_v26 = vld [vmem:[%s2379_s13 + $0x108] sm:$0xff] }
  0x88   : > { %654 = vmatpush2.bf16.msra.mxu0 %v2015_v27  ;;  %v366_v27 = vld [vmem:[%s2379_s13 + $0x118] sm:$0xff] }
  0x89   : > { %655 = vmatprep.subr.bf16.mxu0 %v2016_v28  ;;  %v409_v28 = vpack.c.bf16 %v361_v25, %v359_v24 }
  0x8c   : > { %656 = vmatpush2.bf16.msra.mxu0 %v2018_v29  ;;  %v412_v29 = vpack.c.bf16 %v366_v27, %v364_v26 }
  0x8d   : > { %657 = vmatprep.subr.bf16.mxu0 %v2019_v30  ;;  %v363_v30 = vld [vmem:[%s2379_s13 + $0x100] sm:$0xff] }
  0x90   : > { %658 = vmatpush2.bf16.msra.mxu0 %v2021_v31  ;;  %v365_v31 = vld [vmem:[%s2379_s13 + $0x110] sm:$0xff] }
  0x91   : > { %659 = vmatprep.subr.bf16.mxu0 %v2022_v32  ;;  %v368_v32 = vld [vmem:[%s2379_s13 + $0x128] sm:$0xff] }
  0x94   : > { %660 = vmatpush2.bf16.msra.mxu0 %v2024_v33  ;;  %v370_v33 = vld [vmem:[%s2379_s13 + $0x138] sm:$0xff] }
  0x95   : > { %661 = vmatprep.subr.bf16.mxu0 %v2025_v34  ;;  %v411_v34 = vpack.c.bf16 %v365_v31, %v363_v30  ;;  %v414_v35 = vpack.c.bf16 %v370_v33, %v368_v32 }
  0x98   : > { %662 = vmatpush2.bf16.msra.mxu0 %v2027_v38  ;;  %v369_v38 = vld [vmem:[%s2379_s13 + $0x130] sm:$0xff] }
  0x99   : > { %v413_v42 = vpack.c.bf16 %v369_v38, %v367_v37 }
  0x9b   : > { %664 = vmatmul.mubr.bf16.vlgmr.msra.gmra.mxu0 %v395_v44  ;;  %v416_v44 = vpack.c.bf16 %v374_v41, %v372_v40 }
  0x9c   : > { %673 = vmatprep.mubr.bf16.mxu0 %v398_v46  ;;  %v2042_v46 = vld [vmem:[#allocation8 + $0x40] sm:$0xff]  }
  0x9d   : > { %1807 = vmatprep.subr.bf16.mxu1 %v2042_v46 }
  0x9e   : > { %1808 = vmatpush3.bf16.msra.mxu1 %v2043_v49 }
  0xa3   : > { %674 = vmatmul.mubr.bf16.gmra.mxu0 %v397_v54  ;;  %v375_v54 = vld [vmem:[%s2379_s13 + $0x160] sm:$0xff] }
  0xa4   : > { %683 = vmatprep.mubr.bf16.mxu0 %v400_v56  ;;  %v380_v56 = vld [vmem:[%s2379_s13 + $0x188] sm:$0xff]  ;;  %v417_v58 = vpack.c.bf16 %v377_v55, %v375_v54 }
  0xa5   : > { %v420_v59 = vpack.c.bf16 %v382_v57, %v380_v56 }
  0xab   : > { %684 = vmatmul.mubr.bf16.gmra.mxu0 %v399_v62  ;;  %v384_v62 = vld [vmem:[%s2379_s13 + $0x1a8] sm:$0xff] }
  0xac   : > { %693 = vmatprep.mubr.bf16.mxu0 %v402_v63  ;;  %v386_v63 = vld [vmem:[%s2379_s13 + $0x1b8] sm:$0xff] }
  0xad   : > { %v422_v1 = vpack.c.bf16 %v386_v63, %v384_v62 }
  0xb3   : > { %694 = vmatmul.mubr.bf16.gmra.mxu0 %v401_v4  ;;  %v388_v4 = vld [vmem:[%s2379_s13 + $0x1c8] sm:$0xff] }
  0xb4   : > { %703 = vmatprep.mubr.bf16.mxu0 %v404_v5  ;;  %v390_v5 = vld [vmem:[%s2379_s13 + $0x1d8] sm:$0xff] }
  0xb5   : > { %v424_v7 = vpack.c.bf16 %v390_v5, %v388_v4 }
  0xbb   : > { %704 = vmatmul.mubr.bf16.gmra.mxu0 %v403_v10  ;;  %v392_v10 = vld [vmem:[%s2379_s13 + $0x1e8] sm:$0xff] }
  0xbc   : > { %713 = vmatprep.mubr.bf16.mxu0 %v406_v11  ;;  %v394_v11 = vld [vmem:[%s2379_s13 + $0x1f8] sm:$0xff]  ;;  %s2124_s13 = scalar_lea.vmem %s1634_s25, 32 }
  0xbd   : > { %v426_v13 = vpack.c.bf16 %v394_v11, %v392_v10  ;;  %p2125_p11 = scmp.ne.s32.totalorder %s1634_s25, %s2124_s13  ;;  %p2132_p12 = scmp.lt.s32.totalorder %s2130_s20, %s2124_s13 }
  0xbf   : > { %p2126_p1 = pnand %p2125_p11, %p2828_p10  ;;  %p2133_p3 = por %p2132_p12, %p2131_p6 }
  0xc1   : > { %p2127_p2 = pneg %p2126_p1 }
  0xc3   : > { %714 = vmatmul.mubr.bf16.gmra.mxu0 %v405_v16  ;;  %v425_v16 = vpack.c.bf16 %v393_v15, %v391_v14  ;;  %p2134_p9 = pnand %p2133_p3, %p2127_p2 }
  0xc4   : > { %723 = vmatprep.mubr.bf16.mxu0 %v408_v17  ;;  %v461_v17 = vlaneseq }
  0xc6   : > { %v2454_v18 = vshrl.u32 %v461_v17, 7 }
  0xc8   : > { %v467_v19 = vsub.s32 1, %v2454_v18  ;;  %v463_v20 = vsub.s32 0, %v2454_v18 }
  0xca   : > { %v2463_v24 = vrot.slane %v459_v21, %v463_v20 }
  0xcb   : > { %724 = vmatmul.mubr.bf16.gmra.mxu0 %v407_v22 }
  0xcc   : > { %733 = vmatprep.mubr.bf16.mxu0 %v410_v23  ;;  %v2461_v23 = vrot.slane %v459_v21, %v467_v19 }
  0xd3   : > { %734 = vmatmul.mubr.bf16.gmra.mxu0 %v409_v28 }
  0xd4   : > { %743 = vmatprep.mubr.bf16.mxu0 %v412_v29 }
  0xdb   : > { %744 = vmatmul.mubr.bf16.gmra.mxu0 %v411_v34 }
  0xdc   : > { %753 = vmatprep.mubr.bf16.mxu0 %v414_v35 }
  0xe3   : > { %754 = vmatmul.mubr.bf16.gmra.mxu0 %v413_v42 }
  0xe4   : > { %763 = vmatprep.mubr.bf16.mxu0 %v416_v44 }
  0xeb   : > { %764 = vmatmul.mubr.bf16.gmra.mxu0 %v415_v52 }
  0xec   : > { %773 = vmatprep.mubr.bf16.mxu0 %v418_v53 }
  0xf3   : > { %774 = vmatmul.mubr.bf16.gmra.mxu0 %v417_v58 }
  0xf4   : > { %783 = vmatprep.mubr.bf16.mxu0 %v420_v59 }
  0xfb   : > { %784 = vmatmul.mubr.bf16.gmra.mxu0 %v419_v0 }
  0xfc   : > { %793 = vmatprep.mubr.bf16.mxu0 %v422_v1 }
 0x103   : > { %794 = vmatmul.mubr.bf16.gmra.mxu0 %v421_v6 }
 0x104   : > { %803 = vmatprep.mubr.bf16.mxu0 %v424_v7 }
 0x10b   : > { %804 = vmatmul.mubr.bf16.gmra.mxu0 %v423_v12 }
 0x10c   : > { %813 = vmatprep.mubr.bf16.mxu0 %v426_v13 }
 0x113   : > { %814 = vmatmul.mubr.bf16.gmra.mxu0 %v425_v16 }
 0x15b   : > { %v665_v22 = vpop.f32.mrf.mxu0 }
 0x15c   : > { %v666_v29 = vadd.f32 %v665_v22, %v2463_v24 }
 0x15d   : > { %v667_v25 = vpop.f32.mrf.mxu0 }
 0x15e   : > { %v668_v27 = vadd.f32 %v667_v25, %v2461_v23  ;;  %v824_v36 = vmax.f32 %v666_v29, 0.0 }
 0x15f   : > { %v669_v26 = vpop.f32.mrf.mxu0 }
 0x160   : > { %v670_v28 = vadd.f32 %v669_v26, %v2463_v24  ;;  %v825_v34 = vmax.f32 %v668_v27, 0.0 }
 0x161   : > { %v671_v30 = vpop.f32.mrf.mxu0 }
 0x162   : > { %v672_v31 = vadd.f32 %v671_v30, %v2461_v23  ;;  %v826_v32 = vmax.f32 %v670_v28, 0.0 }
 0x163   : > { %v675_v33 = vpop.f32.mrf.mxu0 }
 0x164   : > { %v827_v35 = vmax.f32 %v672_v31, 0.0  ;;  %v888_v39 = vpack.c.bf16 %v826_v32, %v824_v36  ;;  %v676_v43 = vadd.f32 %v675_v33, %v2463_v24 }
 0x165   : > { %v677_v37 = vpop.f32.mrf.mxu0 }
 0x166   : > { %v889_v38 = vpack.c.bf16 %v827_v35, %v825_v34  ;;  %v678_v41 = vadd.f32 %v677_v37, %v2461_v23  ;;  %v828_v50 = vmax.f32 %v676_v43, 0.0 }
 0x167   : > { %v679_v40 = vpop.f32.mrf.mxu0 }
 0x168   : > { %v680_v42 = vadd.f32 %v679_v40, %v2463_v24  ;;  %1087 = vmatprep.mubr.bf16.mxu1 %v889_v38  ;;  %v829_v48 = vmax.f32 %v678_v41, 0.0 }
 0x169   : > { %v681_v44 = vpop.f32.mrf.mxu0  ;;  %1088 = vmatmul.mubr.bf16.vlgmr.msra.gmra.mxu1 %v888_v39 }
 0x16a   : > { %v682_v45 = vadd.f32 %v681_v44, %v2461_v23  ;;  %v830_v46 = vmax.f32 %v680_v42, 0.0 }
 0x16b   : > { %v685_v47 = vpop.f32.mrf.mxu0 }
 0x16c   : > { %v831_v49 = vmax.f32 %v682_v45, 0.0  ;;  %v890_v53 = vpack.c.bf16 %v830_v46, %v828_v50  ;;  %v686_v57 = vadd.f32 %v685_v47, %v2463_v24 }
 0x16d   : > { %v687_v51 = vpop.f32.mrf.mxu0 }
 0x16e   : > { %v891_v52 = vpack.c.bf16 %v831_v49, %v829_v48  ;;  %v688_v55 = vadd.f32 %v687_v51, %v2461_v23  ;;  %v832_v0 = vmax.f32 %v686_v57, 0.0 }
 0x16f   : > { %v689_v54 = vpop.f32.mrf.mxu0 }
 0x170   : > { %v690_v56 = vadd.f32 %v689_v54, %v2463_v24  ;;  %1095 = vmatprep.mubr.bf16.mxu1 %v891_v52  ;;  %v833_v62 = vmax.f32 %v688_v55, 0.0 }
 0x171   : > { %v691_v58 = vpop.f32.mrf.mxu0  ;;  %1096 = vmatmul.mubr.bf16.gmra.mxu1 %v890_v53 }
 0x172   : > { %v692_v59 = vadd.f32 %v691_v58, %v2461_v23  ;;  %v834_v60 = vmax.f32 %v690_v56, 0.0 }
 0x173   : > { %v695_v61 = vpop.f32.mrf.mxu0 }
 0x174   : > { %v835_v63 = vmax.f32 %v692_v59, 0.0  ;;  %v892_v3 = vpack.c.bf16 %v834_v60, %v832_v0  ;;  %v696_v7 = vadd.f32 %v695_v61, %v2463_v24 }
 0x175   : > { %v697_v1 = vpop.f32.mrf.mxu0 }
 0x176   : > { %v893_v2 = vpack.c.bf16 %v835_v63, %v833_v62  ;;  %v698_v5 = vadd.f32 %v697_v1, %v2461_v23  ;;  %v836_v14 = vmax.f32 %v696_v7, 0.0 }
 0x177   : > { %v699_v4 = vpop.f32.mrf.mxu0 }
 0x178   : > { %v700_v6 = vadd.f32 %v699_v4, %v2463_v24  ;;  %1103 = vmatprep.mubr.bf16.mxu1 %v893_v2  ;;  %v837_v12 = vmax.f32 %v698_v5, 0.0 }
 0x179   : > { %v701_v8 = vpop.f32.mrf.mxu0  ;;  %1104 = vmatmul.mubr.bf16.gmra.mxu1 %v892_v3 }
 0x17a   : > { %v702_v9 = vadd.f32 %v701_v8, %v2461_v23  ;;  %v838_v10 = vmax.f32 %v700_v6, 0.0 }
 0x17b   : > { %v705_v11 = vpop.f32.mrf.mxu0 }
 0x17c   : > { %v839_v13 = vmax.f32 %v702_v9, 0.0  ;;  %v894_v19 = vpack.c.bf16 %v838_v10, %v836_v14  ;;  %v706_v25 = vadd.f32 %v705_v11, %v2463_v24 }
 0x17d   : > { %v707_v15 = vpop.f32.mrf.mxu0 }
 0x17e   : > { %v895_v16 = vpack.c.bf16 %v839_v13, %v837_v12  ;;  %v708_v21 = vadd.f32 %v707_v15, %v2461_v23  ;;  %v840_v32 = vmax.f32 %v706_v25, 0.0 }
 0x17f   : > { %v709_v20 = vpop.f32.mrf.mxu0 }
 0x180   : > { %v710_v22 = vadd.f32 %v709_v20, %v2463_v24  ;;  %1111 = vmatprep.mubr.bf16.mxu1 %v895_v16  ;;  %v841_v30 = vmax.f32 %v708_v21, 0.0 }
 0x181   : > { %v711_v26 = vpop.f32.mrf.mxu0  ;;  %1112 = vmatmul.mubr.bf16.gmra.mxu1 %v894_v19 }
 0x182   : > { %v712_v27 = vadd.f32 %v711_v26, %v2461_v23  ;;  %v842_v28 = vmax.f32 %v710_v22, 0.0 }
 0x183   : > { %v715_v29 = vpop.f32.mrf.mxu0 }
 0x184   : > { %v843_v31 = vmax.f32 %v712_v27, 0.0  ;;  %v896_v35 = vpack.c.bf16 %v842_v28, %v840_v32  ;;  %v716_v39 = vadd.f32 %v715_v29, %v2463_v24 }
 0x185   : > { %v717_v33 = vpop.f32.mrf.mxu0 }
 0x186   : > { %v897_v34 = vpack.c.bf16 %v843_v31, %v841_v30  ;;  %v718_v37 = vadd.f32 %v717_v33, %v2461_v23  ;;  %v844_v46 = vmax.f32 %v716_v39, 0.0 }
 0x187   : > { %v719_v36 = vpop.f32.mrf.mxu0 }
 0x188   : > { %v720_v38 = vadd.f32 %v719_v36, %v2463_v24  ;;  %1119 = vmatprep.mubr.bf16.mxu1 %v897_v34  ;;  %v845_v44 = vmax.f32 %v718_v37, 0.0 }
 0x189   : > { %v721_v40 = vpop.f32.mrf.mxu0  ;;  %1120 = vmatmul.mubr.bf16.gmra.mxu1 %v896_v35 }
 0x18a   : > { %v722_v41 = vadd.f32 %v721_v40, %v2461_v23  ;;  %v846_v42 = vmax.f32 %v720_v38, 0.0 }
 0x18b   : > { %v725_v43 = vpop.f32.mrf.mxu0 }
 0x18c   : > { %v847_v45 = vmax.f32 %v722_v41, 0.0  ;;  %v898_v49 = vpack.c.bf16 %v846_v42, %v844_v46  ;;  %v726_v53 = vadd.f32 %v725_v43, %v2463_v24 }
 0x18d   : > { %v727_v47 = vpop.f32.mrf.mxu0 }
 0x18e   : > { %v899_v48 = vpack.c.bf16 %v847_v45, %v845_v44  ;;  %v728_v51 = vadd.f32 %v727_v47, %v2461_v23  ;;  %v848_v60 = vmax.f32 %v726_v53, 0.0 }
 0x18f   : > { %v729_v50 = vpop.f32.mrf.mxu0 }
 0x190   : > { %v730_v52 = vadd.f32 %v729_v50, %v2463_v24  ;;  %1127 = vmatprep.mubr.bf16.mxu1 %v899_v48  ;;  %v849_v58 = vmax.f32 %v728_v51, 0.0 }
 0x191   : > { %v731_v54 = vpop.f32.mrf.mxu0  ;;  %1128 = vmatmul.mubr.bf16.gmra.mxu1 %v898_v49 }
 0x192   : > { %v732_v55 = vadd.f32 %v731_v54, %v2461_v23  ;;  %v850_v56 = vmax.f32 %v730_v52, 0.0 }
 0x193   : > { %v735_v57 = vpop.f32.mrf.mxu0 }
 0x194   : > { %v851_v59 = vmax.f32 %v732_v55, 0.0  ;;  %v900_v63 = vpack.c.bf16 %v850_v56, %v848_v60  ;;  %v736_v3 = vadd.f32 %v735_v57, %v2463_v24 }
 0x195   : > { %v737_v61 = vpop.f32.mrf.mxu0 }
 0x196   : > { %v901_v62 = vpack.c.bf16 %v851_v59, %v849_v58  ;;  %v738_v1 = vadd.f32 %v737_v61, %v2461_v23  ;;  %v852_v10 = vmax.f32 %v736_v3, 0.0 }
 0x197   : > { %v739_v0 = vpop.f32.mrf.mxu0 }
 0x198   : > { %v740_v2 = vadd.f32 %v739_v0, %v2463_v24  ;;  %1135 = vmatprep.mubr.bf16.mxu1 %v901_v62  ;;  %v853_v8 = vmax.f32 %v738_v1, 0.0 }
 0x199   : > { %v741_v4 = vpop.f32.mrf.mxu0  ;;  %1136 = vmatmul.mubr.bf16.gmra.mxu1 %v900_v63 }
 0x19a   : > { %v742_v5 = vadd.f32 %v741_v4, %v2461_v23  ;;  %v854_v6 = vmax.f32 %v740_v2, 0.0 }
 0x19b   : > { %v745_v7 = vpop.f32.mrf.mxu0 }
 0x19c   : > { %v855_v9 = vmax.f32 %v742_v5, 0.0  ;;  %v902_v13 = vpack.c.bf16 %v854_v6, %v852_v10  ;;  %v746_v19 = vadd.f32 %v745_v7, %v2463_v24 }
 0x19d   : > { %v747_v11 = vpop.f32.mrf.mxu0 }
 0x19e   : > { %v903_v12 = vpack.c.bf16 %v855_v9, %v853_v8  ;;  %v748_v15 = vadd.f32 %v747_v11, %v2461_v23  ;;  %v856_v28 = vmax.f32 %v746_v19, 0.0 }
 0x19f   : > { %v749_v14 = vpop.f32.mrf.mxu0 }
 0x1a0   : > { %v750_v16 = vadd.f32 %v749_v14, %v2463_v24  ;;  %1143 = vmatprep.mubr.bf16.mxu1 %v903_v12  ;;  %v857_v26 = vmax.f32 %v748_v15, 0.0 }
 0x1a1   : > { %v751_v20 = vpop.f32.mrf.mxu0  ;;  %1144 = vmatmul.mubr.bf16.gmra.mxu1 %v902_v13 }
 0x1a2   : > { %v752_v21 = vadd.f32 %v751_v20, %v2461_v23  ;;  %v858_v22 = vmax.f32 %v750_v16, 0.0 }
 0x1a3   : > { %v755_v25 = vpop.f32.mrf.mxu0 }
 0x1a4   : > { %v859_v27 = vmax.f32 %v752_v21, 0.0  ;;  %v904_v31 = vpack.c.bf16 %v858_v22, %v856_v28  ;;  %v756_v35 = vadd.f32 %v755_v25, %v2463_v24 }
 0x1a5   : > { %v757_v29 = vpop.f32.mrf.mxu0 }
 0x1a6   : > { %v905_v30 = vpack.c.bf16 %v859_v27, %v857_v26  ;;  %v758_v33 = vadd.f32 %v757_v29, %v2461_v23  ;;  %v860_v42 = vmax.f32 %v756_v35, 0.0 }
 0x1a7   : > { %v759_v32 = vpop.f32.mrf.mxu0 }
 0x1a8   : > { %v760_v34 = vadd.f32 %v759_v32, %v2463_v24  ;;  %1151 = vmatprep.mubr.bf16.mxu1 %v905_v30  ;;  %v861_v40 = vmax.f32 %v758_v33, 0.0 }
 0x1a9   : > { %v761_v36 = vpop.f32.mrf.mxu0  ;;  %1152 = vmatmul.mubr.bf16.gmra.mxu1 %v904_v31 }
 0x1aa   : > { %v762_v37 = vadd.f32 %v761_v36, %v2461_v23  ;;  %v862_v38 = vmax.f32 %v760_v34, 0.0 }
 0x1ab   : > { %v765_v39 = vpop.f32.mrf.mxu0 }
 0x1ac   : > { %v863_v41 = vmax.f32 %v762_v37, 0.0  ;;  %v906_v45 = vpack.c.bf16 %v862_v38, %v860_v42  ;;  %v766_v49 = vadd.f32 %v765_v39, %v2463_v24 }
 0x1ad   : > { %v767_v43 = vpop.f32.mrf.mxu0 }
 0x1ae   : > { %v907_v44 = vpack.c.bf16 %v863_v41, %v861_v40  ;;  %v768_v47 = vadd.f32 %v767_v43, %v2461_v23  ;;  %v864_v56 = vmax.f32 %v766_v49, 0.0 }
 0x1af   : > { %v769_v46 = vpop.f32.mrf.mxu0 }
 0x1b0   : > { %v770_v48 = vadd.f32 %v769_v46, %v2463_v24  ;;  %1159 = vmatprep.mubr.bf16.mxu1 %v907_v44  ;;  %v865_v54 = vmax.f32 %v768_v47, 0.0 }
 0x1b1   : > { %v771_v50 = vpop.f32.mrf.mxu0  ;;  %1160 = vmatmul.mubr.bf16.gmra.mxu1 %v906_v45 }
 0x1b2   : > { %v772_v51 = vadd.f32 %v771_v50, %v2461_v23  ;;  %v866_v52 = vmax.f32 %v770_v48, 0.0 }
 0x1b3   : > { %v775_v53 = vpop.f32.mrf.mxu0 }
 0x1b4   : > { %v867_v55 = vmax.f32 %v772_v51, 0.0  ;;  %v908_v59 = vpack.c.bf16 %v866_v52, %v864_v56  ;;  %v776_v63 = vadd.f32 %v775_v53, %v2463_v24 }
 0x1b5   : > { %v777_v57 = vpop.f32.mrf.mxu0 }
 0x1b6   : > { %v909_v58 = vpack.c.bf16 %v867_v55, %v865_v54  ;;  %v778_v61 = vadd.f32 %v777_v57, %v2461_v23  ;;  %v868_v6 = vmax.f32 %v776_v63, 0.0 }
 0x1b7   : > { %v779_v60 = vpop.f32.mrf.mxu0 }
 0x1b8   : > { %v780_v62 = vadd.f32 %v779_v60, %v2463_v24  ;;  %1167 = vmatprep.mubr.bf16.mxu1 %v909_v58  ;;  %v869_v4 = vmax.f32 %v778_v61, 0.0 }
 0x1b9   : > { %v781_v0 = vpop.f32.mrf.mxu0  ;;  %1168 = vmatmul.mubr.bf16.gmra.mxu1 %v908_v59 }
 0x1ba   : > { %v782_v1 = vadd.f32 %v781_v0, %v2461_v23  ;;  %v870_v2 = vmax.f32 %v780_v62, 0.0 }
 0x1bb   : > { %v785_v3 = vpop.f32.mrf.mxu0 }
 0x1bc   : > { %v871_v5 = vmax.f32 %v782_v1, 0.0  ;;  %v910_v9 = vpack.c.bf16 %v870_v2, %v868_v6  ;;  %v786_v13 = vadd.f32 %v785_v3, %v2463_v24 }
 0x1bd   : > { %v787_v7 = vpop.f32.mrf.mxu0 }
 0x1be   : > { %v911_v8 = vpack.c.bf16 %v871_v5, %v869_v4  ;;  %v788_v11 = vadd.f32 %v787_v7, %v2461_v23  ;;  %v872_v22 = vmax.f32 %v786_v13, 0.0  ;;  %v2203_v4 = vmov 0  }
 0x1bf   : > { %v789_v10 = vpop.f32.mrf.mxu0  ;;  %1979 = vset.pattern.permute.xlu0 %v2203_v4 }
 0x1c0   : > { %v790_v12 = vadd.f32 %v789_v10, %v2463_v24  ;;  %1175 = vmatprep.mubr.bf16.mxu1 %v911_v8  ;;  %v873_v20 = vmax.f32 %v788_v11, 0.0  ;;  %v2538_v10 = vld [vmem:[%s2810_s5] ss:$0 sm:$0xff] }
 0x1c1   : > { %v791_v14 = vpop.f32.mrf.mxu0  ;;  %1176 = vmatmul.mubr.bf16.gmra.mxu1 %v910_v9 }
 0x1c2   : > { %v792_v15 = vadd.f32 %v791_v14, %v2461_v23  ;;  %v874_v16 = vmax.f32 %v790_v12, 0.0 }
 0x1c3   : > { %v795_v19 = vpop.f32.mrf.mxu0 }
 0x1c4   : > { %v875_v21 = vmax.f32 %v792_v15, 0.0  ;;  %v912_v27 = vpack.c.bf16 %v874_v16, %v872_v22  ;;  %v796_v31 = vadd.f32 %v795_v19, %v2463_v24 }
 0x1c5   : > { %v797_v25 = vpop.f32.mrf.mxu0 }
 0x1c6   : > { %v913_v26 = vpack.c.bf16 %v875_v21, %v873_v20  ;;  %v798_v29 = vadd.f32 %v797_v25, %v2461_v23  ;;  %v876_v38 = vmax.f32 %v796_v31, 0.0 }
 0x1c7   : > { %v799_v28 = vpop.f32.mrf.mxu0 }
 0x1c8   : > { %v800_v30 = vadd.f32 %v799_v28, %v2463_v24  ;;  %1183 = vmatprep.mubr.bf16.mxu1 %v913_v26  ;;  %v877_v36 = vmax.f32 %v798_v29, 0.0 }
 0x1c9   : > { %v801_v32 = vpop.f32.mrf.mxu0  ;;  %1184 = vmatmul.mubr.bf16.gmra.mxu1 %v912_v27 }
 0x1ca   : > { %v802_v33 = vadd.f32 %v801_v32, %v2461_v23  ;;  %v878_v34 = vmax.f32 %v800_v30, 0.0 }
 0x1cb   : > { %v805_v35 = vpop.f32.mrf.mxu0 }
 0x1cc   : > { %v879_v37 = vmax.f32 %v802_v33, 0.0  ;;  %v914_v41 = vpack.c.bf16 %v878_v34, %v876_v38  ;;  %v806_v45 = vadd.f32 %v805_v35, %v2463_v24 }
 0x1cd   : > { %v807_v39 = vpop.f32.mrf.mxu0 }
 0x1ce   : > { %v915_v40 = vpack.c.bf16 %v879_v37, %v877_v36  ;;  %v808_v43 = vadd.f32 %v807_v39, %v2461_v23  ;;  %v880_v52 = vmax.f32 %v806_v45, 0.0 }
 0x1cf   : > { %v809_v42 = vpop.f32.mrf.mxu0 }
 0x1d0   : > { %v810_v44 = vadd.f32 %v809_v42, %v2463_v24  ;;  %1191 = vmatprep.mubr.bf16.mxu1 %v915_v40  ;;  %v881_v50 = vmax.f32 %v808_v43, 0.0 }
 0x1d1   : > { %v811_v46 = vpop.f32.mrf.mxu0  ;;  %1192 = vmatmul.mubr.bf16.gmra.mxu1 %v914_v41 }
 0x1d2   : > { %v812_v47 = vadd.f32 %v811_v46, %v2461_v23  ;;  %v882_v48 = vmax.f32 %v810_v44, 0.0 }
 0x1d3   : > { %v815_v49 = vpop.f32.mrf.mxu0 }
 0x1d4   : > { %v883_v51 = vmax.f32 %v812_v47, 0.0  ;;  %v916_v55 = vpack.c.bf16 %v882_v48, %v880_v52  ;;  %v816_v59 = vadd.f32 %v815_v49, %v2463_v24 }
 0x1d5   : > { %v817_v53 = vpop.f32.mrf.mxu0 }
 0x1d6   : > { %v917_v54 = vpack.c.bf16 %v883_v51, %v881_v50  ;;  %v818_v57 = vadd.f32 %v817_v53, %v2461_v23  ;;  %v884_v1 = vmax.f32 %v816_v59, 0.0 }
 0x1d7   : > { %v819_v56 = vpop.f32.mrf.mxu0 }
 0x1d8   : > { %v820_v58 = vadd.f32 %v819_v56, %v2463_v24  ;;  %1199 = vmatprep.mubr.bf16.mxu1 %v917_v54  ;;  %v885_v63 = vmax.f32 %v818_v57, 0.0  ;;  %v2532_v24 = vld [vmem:[%s2809_s4] ss:$0 sm:$0xff] }
 0x1d9   : > { %v821_v60 = vpop.f32.mrf.mxu0  ;;  %1200 = vmatmul.mubr.bf16.gmra.mxu1 %v916_v55 }
 0x1da   : > { %v822_v61 = vadd.f32 %v821_v60, %v2461_v23  ;;  %v886_v62 = vmax.f32 %v820_v58, 0.0 }
 0x1dc   : > { %v887_v0 = vmax.f32 %v822_v61, 0.0  ;;  %v918_v3 = vpack.c.bf16 %v886_v62, %v884_v1 }
 0x1de   : > { %v919_v2 = vpack.c.bf16 %v887_v0, %v885_v63 }
 0x1e0   : > { %1207 = vmatprep.mubr.bf16.mxu1 %v919_v2 }
 0x1e1   : > { %1208 = vmatmul.mubr.bf16.gmra.mxu1 %v918_v3 }
 0x229   : > { %v1809_v5 = vpop.f32.mrf.mxu1 }
 0x22b   : > { %v1810_v6 = vpop.f32.mrf.mxu1 }
 0x22c   : > { %v1811_v7 = vadd.f32 %v1810_v6, %v1809_v5 }
 0x22d   : > { %v1812_v8 = vpop.f32.mrf.mxu1 }
 0x22e   : > { %v1090_v23 = vadd.f32 %v1811_v7, %v2532_v24 }
 0x22f   : > { %v1813_v9 = vpop.f32.mrf.mxu1 }
 0x230   : > { %v1814_v11 = vadd.f32 %v1813_v9, %v1812_v8  ;;  %v1216_v12 = vmax.f32 %v1090_v23, 0.0 }
 0x231   : > { %v1815_v13 = vpop.f32.mrf.mxu1 }
 0x232   : > { %v1093_v14 = vadd.f32 %v1814_v11, %v2532_v24  ;;  %v1255_v15 = vmul.f32 %v2538_v10, %v1216_v12 }
 0x233   : > { %v1816_v16 = vpop.f32.mrf.mxu1 }
 0x234   : > { %v1217_v19 = vmax.f32 %v1093_v14, 0.0  ;;  %v1817_v20 = vadd.f32 %v1816_v16, %v1815_v13  ;;  %1287 = vadd.xlane.f32.xlu0 %v1255_v15 }
 0x235   : > { %v1818_v21 = vpop.f32.mrf.mxu1 }
 0x236   : > { %v1098_v22 = vadd.f32 %v1817_v20, %v2532_v24  ;;  %v1256_v25 = vmul.f32 %v2538_v10, %v1217_v19 }
 0x237   : > { %v1819_v26 = vpop.f32.mrf.mxu1 }
 0x238   : > { %v1218_v27 = vmax.f32 %v1098_v22, 0.0  ;;  %v1820_v28 = vadd.f32 %v1819_v26, %v1818_v21  ;;  %1289 = vadd.xlane.f32.xlu0 %v1256_v25 }
 0x239   : > { %v1821_v29 = vpop.f32.mrf.mxu1 }
 0x23a   : > { %v1101_v30 = vadd.f32 %v1820_v28, %v2532_v24  ;;  %v1257_v31 = vmul.f32 %v2538_v10, %v1218_v27 }
 0x23b   : > { %v1822_v32 = vpop.f32.mrf.mxu1 }
 0x23c   : > { %v1219_v33 = vmax.f32 %v1101_v30, 0.0  ;;  %v1823_v34 = vadd.f32 %v1822_v32, %v1821_v29  ;;  %1291 = vadd.xlane.f32.xlu0 %v1257_v31 }
 0x23d   : > { %v1824_v35 = vpop.f32.mrf.mxu1 }
 0x23e   : > { %v1106_v36 = vadd.f32 %v1823_v34, %v2532_v24  ;;  %v1258_v37 = vmul.f32 %v2538_v10, %v1219_v33 }
 0x23f   : > { %v1825_v38 = vpop.f32.mrf.mxu1 }
 0x240   : > { %v1220_v39 = vmax.f32 %v1106_v36, 0.0  ;;  %v1826_v40 = vadd.f32 %v1825_v38, %v1824_v35  ;;  %1293 = vadd.xlane.f32.xlu0 %v1258_v37 }
 0x241   : > { %v1827_v41 = vpop.f32.mrf.mxu1 }
 0x242   : > { %v1109_v42 = vadd.f32 %v1826_v40, %v2532_v24  ;;  %v1259_v43 = vmul.f32 %v2538_v10, %v1220_v39  ;;  %v1786_v39 = vld [vmem:[#allocation2] ss:$0 sm:$0xff] }
 0x243   : > { %v1828_v44 = vpop.f32.mrf.mxu1 }
 0x244   : > { %v1221_v45 = vmax.f32 %v1109_v42, 0.0  ;;  %v1829_v46 = vadd.f32 %v1828_v44, %v1827_v41  ;;  %1295 = vadd.xlane.f32.xlu0 %v1259_v43 }
 0x245   : > { %v1830_v47 = vpop.f32.mrf.mxu1 }
 0x246   : > { %v1114_v48 = vadd.f32 %v1829_v46, %v2532_v24  ;;  %v1260_v49 = vmul.f32 %v2538_v10, %v1221_v45 }
 0x247   : > { %v1831_v50 = vpop.f32.mrf.mxu1 }
 0x248   : > { %v1222_v51 = vmax.f32 %v1114_v48, 0.0  ;;  %v1832_v52 = vadd.f32 %v1831_v50, %v1830_v47  ;;  %1297 = vadd.xlane.f32.xlu0 %v1260_v49 }
 0x249   : > { %v1833_v53 = vpop.f32.mrf.mxu1 }
 0x24a   : > { %v1117_v54 = vadd.f32 %v1832_v52, %v2532_v24  ;;  %v1261_v55 = vmul.f32 %v2538_v10, %v1222_v51 }
 0x24b   : > { %v1834_v56 = vpop.f32.mrf.mxu1 }
 0x24c   : > { %v1223_v57 = vmax.f32 %v1117_v54, 0.0  ;;  %v1835_v58 = vadd.f32 %v1834_v56, %v1833_v53  ;;  %1299 = vadd.xlane.f32.xlu0 %v1261_v55 }
 0x24d   : > { %v1836_v59 = vpop.f32.mrf.mxu1 }
 0x24e   : > { %v1122_v60 = vadd.f32 %v1835_v58, %v2532_v24  ;;  %v1262_v61 = vmul.f32 %v2538_v10, %v1223_v57 }
 0x24f   : > { %v1837_v62 = vpop.f32.mrf.mxu1 }
 0x250   : > { %v1224_v63 = vmax.f32 %v1122_v60, 0.0  ;;  %v1838_v0 = vadd.f32 %v1837_v62, %v1836_v59  ;;  %1301 = vadd.xlane.f32.xlu0 %v1262_v61 }
 0x251   : > { %v1839_v1 = vpop.f32.mrf.mxu1 }
 0x252   : > { %v1263_v2 = vmul.f32 %v2538_v10, %v1224_v63  ;;  %v1125_v3 = vadd.f32 %v1838_v0, %v2532_v24 }
 0x253   : > { %v1840_v4 = vpop.f32.mrf.mxu1 }
 0x254   : > { %v1841_v5 = vadd.f32 %v1840_v4, %v1839_v1  ;;  %1303 = vadd.xlane.f32.xlu0 %v1263_v2  ;;  %v1225_v6 = vmax.f32 %v1125_v3, 0.0 }
 0x255   : > { %v1842_v7 = vpop.f32.mrf.mxu1 }
 0x256   : > { %v1130_v8 = vadd.f32 %v1841_v5, %v2532_v24  ;;  %v1264_v23 = vmul.f32 %v2538_v10, %v1225_v6 }
 0x257   : > { %v1843_v9 = vpop.f32.mrf.mxu1 }
 0x258   : > { %v1226_v11 = vmax.f32 %v1130_v8, 0.0  ;;  %v1844_v12 = vadd.f32 %v1843_v9, %v1842_v7  ;;  %1305 = vadd.xlane.f32.xlu1 %v1264_v23 }
 0x259   : > { %v1845_v13 = vpop.f32.mrf.mxu1 }
 0x25a   : > { %v1133_v14 = vadd.f32 %v1844_v12, %v2532_v24  ;;  %v1265_v15 = vmul.f32 %v2538_v10, %v1226_v11 }
 0x25b   : > { %v1846_v16 = vpop.f32.mrf.mxu1 }
 0x25c   : > { %v1227_v19 = vmax.f32 %v1133_v14, 0.0  ;;  %v1847_v20 = vadd.f32 %v1846_v16, %v1845_v13  ;;  %1307 = vadd.xlane.f32.xlu1 %v1265_v15 }
 0x25d   : > { %v1848_v21 = vpop.f32.mrf.mxu1 }
 0x25e   : > { %v1138_v22 = vadd.f32 %v1847_v20, %v2532_v24  ;;  %v1266_v25 = vmul.f32 %v2538_v10, %v1227_v19 }
 0x25f   : > { %v1849_v26 = vpop.f32.mrf.mxu1 }
 0x260   : > { %v1228_v27 = vmax.f32 %v1138_v22, 0.0  ;;  %v1850_v28 = vadd.f32 %v1849_v26, %v1848_v21  ;;  %1309 = vadd.xlane.f32.xlu1 %v1266_v25 }
 0x261   : > { %v1851_v29 = vpop.f32.mrf.mxu1 }
 0x262   : > { %v1141_v30 = vadd.f32 %v1850_v28, %v2532_v24  ;;  %v1267_v31 = vmul.f32 %v2538_v10, %v1228_v27 }
 0x263   : > { %v1852_v32 = vpop.f32.mrf.mxu1 }
 0x264   : > { %v1229_v33 = vmax.f32 %v1141_v30, 0.0  ;;  %v1853_v34 = vadd.f32 %v1852_v32, %v1851_v29  ;;  %1311 = vadd.xlane.f32.xlu1 %v1267_v31 }
 0x265   : > { %v2566_v35 = vpop.f32.mrf.mxu1 }
 0x266   : > { %v1146_v36 = vadd.f32 %v1853_v34, %v2532_v24  ;;  %v1268_v37 = vmul.f32 %v2538_v10, %v1229_v33 }
 0x267   : > { %v2570_v38 = vpop.f32.mrf.mxu1 }
 0x268   : > { %v1230_v40 = vmax.f32 %v1146_v36, 0.0  ;;  %1313 = vadd.xlane.f32.xlu1 %v1268_v37 }
 0x269   : > { %v1857_v41 = vpop.f32.mrf.mxu1 }
 0x26a   : > { %1358 = vperm.xlu0 %1979, %v1786_v39   ;;  %v1269_v42 = vmul.f32 %v2538_v10, %v1230_v40 }
 0x26b   : > { %v1858_v43 = vpop.f32.mrf.mxu1 }
 0x26c   : > { %v1859_v44 = vadd.f32 %v1858_v43, %v1857_v41  ;;  %1315 = vadd.xlane.f32.xlu1 %v1269_v42 }
 0x26d   : > { %v1860_v45 = vpop.f32.mrf.mxu1 }
 0x26e   : > { %v1154_v46 = vadd.f32 %v1859_v44, %v2532_v24 }
 0x26f   : > { %v1861_v47 = vpop.f32.mrf.mxu1 }
 0x270   : > { %v1232_v48 = vmax.f32 %v1154_v46, 0.0  ;;  %v1862_v49 = vadd.f32 %v1861_v47, %v1860_v45 }
 0x271   : > { %v1863_v50 = vpop.f32.mrf.mxu1 }
 0x272   : > { %v1157_v51 = vadd.f32 %v1862_v49, %v2532_v24  ;;  %v1271_v52 = vmul.f32 %v2538_v10, %v1232_v48 }
 0x273   : > { %v1864_v53 = vpop.f32.mrf.mxu1 }
 0x274   : > { %v1233_v54 = vmax.f32 %v1157_v51, 0.0  ;;  %v1865_v55 = vadd.f32 %v1864_v53, %v1863_v50  ;;  %1319 = vadd.xlane.f32.xlu1 %v1271_v52 }
 0x275   : > { %v1866_v56 = vpop.f32.mrf.mxu1 }
 0x276   : > { %v1162_v57 = vadd.f32 %v1865_v55, %v2532_v24  ;;  %v1272_v58 = vmul.f32 %v2538_v10, %v1233_v54 }
 0x277   : > { %v1867_v59 = vpop.f32.mrf.mxu1 }
 0x278   : > { %v1234_v60 = vmax.f32 %v1162_v57, 0.0  ;;  %v1868_v61 = vadd.f32 %v1867_v59, %v1866_v56  ;;  %1321 = vadd.xlane.f32.xlu1 %v1272_v58  ;;  %v1856_v59 = vadd.f32 %v2570_v38, %v2566_v35 }
 0x279   : > { %v1869_v62 = vpop.f32.mrf.mxu1 }
 0x27a   : > { %v1165_v63 = vadd.f32 %v1868_v61, %v2532_v24  ;;  %v1273_v0 = vmul.f32 %v2538_v10, %v1234_v60 }
 0x27b   : > { %v1870_v1 = vpop.f32.mrf.mxu1 }
 0x27c   : > { %v1235_v2 = vmax.f32 %v1165_v63, 0.0  ;;  %v1871_v3 = vadd.f32 %v1870_v1, %v1869_v62  ;;  %1323 = vadd.xlane.f32.xlu1 %v1273_v0 }
 0x27d   : > { %v1872_v4 = vpop.f32.mrf.mxu1 }
 0x27e   : > { %v1170_v5 = vadd.f32 %v1871_v3, %v2532_v24  ;;  %v1274_v6 = vmul.f32 %v2538_v10, %v1235_v2  ;;  %v1149_v2 = vadd.f32 %v1856_v59, %v2532_v24 }
 0x27f   : > { %v1873_v7 = vpop.f32.mrf.mxu1 }
 0x280   : > { %v1236_v8 = vmax.f32 %v1170_v5, 0.0  ;;  %v1874_v23 = vadd.f32 %v1873_v7, %v1872_v4  ;;  %1325 = vadd.xlane.f32.xlu1 %v1274_v6  ;;  %v1231_v38 = vmax.f32 %v1149_v2, 0.0 }
 0x281   : > { %v1875_v9 = vpop.f32.mrf.mxu1 }
 0x282   : > { %v1173_v11 = vadd.f32 %v1874_v23, %v2532_v24  ;;  %v1275_v12 = vmul.f32 %v2538_v10, %v1236_v8 }
 0x283   : > { %v1876_v13 = vpop.f32.mrf.mxu1 }
 0x284   : > { %v1237_v14 = vmax.f32 %v1173_v11, 0.0  ;;  %v1877_v15 = vadd.f32 %v1876_v13, %v1875_v9  ;;  %1327 = vadd.xlane.f32.xlu1 %v1275_v12 }
 0x285   : > { %v1878_v16 = vpop.f32.mrf.mxu1 }
 0x286   : > { %v1178_v19 = vadd.f32 %v1877_v15, %v2532_v24  ;;  %v1276_v20 = vmul.f32 %v2538_v10, %v1237_v14  ;;  %v1270_v14 = vmul.f32 %v2538_v10, %v1231_v38 }
 0x287   : > { %v1879_v21 = vpop.f32.mrf.mxu1 }
 0x288   : > { %v1238_v22 = vmax.f32 %v1178_v19, 0.0  ;;  %v1880_v25 = vadd.f32 %v1879_v21, %v1878_v16  ;;  %1329 = vadd.xlane.f32.xlu1 %v1276_v20 }
 0x289   : > { %v1881_v26 = vpop.f32.mrf.mxu1 }
 0x28a   : > { %v1181_v27 = vadd.f32 %v1880_v25, %v2532_v24  ;;  %v1277_v28 = vmul.f32 %v2538_v10, %v1238_v22 }
 0x28b   : > { %v1882_v29 = vpop.f32.mrf.mxu1 }
 0x28c   : > { %v1239_v30 = vmax.f32 %v1181_v27, 0.0  ;;  %v1883_v31 = vadd.f32 %v1882_v29, %v1881_v26  ;;  %1331 = vadd.xlane.f32.xlu1 %v1277_v28  ;;  %v2610_v29 = vand.u32 127, %v461_v17 }
 0x28d   : > { %v1884_v32 = vpop.f32.mrf.mxu1 }
 0x28e   : > { %v1186_v33 = vadd.f32 %v1883_v31, %v2532_v24  ;;  %v1278_v34 = vmul.f32 %v2538_v10, %v1239_v30  ;;  %v1501_v30 = vadd.s32 4294967208, %v2610_v29  ;;  %v1431_v31 = vadd.s32 4294967288, %v2610_v29 }
 0x28f   : > { %v1885_v36 = vpop.f32.mrf.mxu1  ;;  %v1473_v17 = vadd.s32 4294967240, %v2610_v29 }
 0x290   : > { %v1240_v37 = vmax.f32 %v1186_v33, 0.0  ;;  %v1886_v39 = vadd.f32 %v1885_v36, %v1884_v32  ;;  %1333 = vadd.xlane.f32.xlu1 %v1278_v34  ;;  %v1438_v32 = vadd.s32 4294967280, %v2610_v29  ;;  %v1452_v33 = vadd.s32 4294967264, %v2610_v29 }
 0x291   : > { %v1887_v40 = vpop.f32.mrf.mxu1  ;;  %v1459_v34 = vadd.s32 4294967256, %v2610_v29 }
 0x292   : > { %v1189_v41 = vadd.f32 %v1886_v39, %v2532_v24  ;;  %v1279_v42 = vmul.f32 %v2538_v10, %v1240_v37  ;;  %v1466_v39 = vadd.s32 4294967248, %v2610_v29 }
 0x293   : > { %v1888_v43 = vpop.f32.mrf.mxu1 }
 0x294   : > { %v1241_v44 = vmax.f32 %v1189_v41, 0.0  ;;  %v1889_v45 = vadd.f32 %v1888_v43, %v1887_v40  ;;  %1335 = vadd.xlane.f32.xlu1 %v1279_v42  ;;  %v2621_v40 = vsub.s32 %v1501_v30, %v2454_v18  ;;  %v2625_v41 = vsub.s32 %v2610_v29, %v2454_v18 }
 0x295   : > { %v1890_v46 = vpop.f32.mrf.mxu1  ;;  %v2628_v42 = vsub.s32 %v1431_v31, %v2454_v18  ;;  %v2631_v43 = vsub.s32 %v1438_v32, %v2454_v18 }
 0x296   : > { %v1194_v47 = vadd.f32 %v1889_v45, %v2532_v24  ;;  %v1280_v48 = vmul.f32 %v2538_v10, %v1241_v44  ;;  %v1480_v45 = vadd.s32 4294967232, %v2610_v29 }
 0x297   : > { %v1891_v49 = vpop.f32.mrf.mxu1 }
 0x298   : > { %v1242_v50 = vmax.f32 %v1194_v47, 0.0  ;;  %v1892_v51 = vadd.f32 %v1891_v49, %v1890_v46  ;;  %1337 = vadd.xlane.f32.xlu1 %v1280_v48  ;;  %v1487_v46 = vadd.s32 4294967224, %v2610_v29  ;;  %v2639_v47 = vsub.s32 %v1452_v33, %v2454_v18 }
 0x299   : > { %v1893_v52 = vpop.f32.mrf.mxu1  ;;  %v2642_v48 = vsub.s32 %v1459_v34, %v2454_v18  ;;  %v2659_v59 = vsub.s32 %v1480_v45, %v2454_v18 }
 0x29a   : > { %v1197_v53 = vadd.f32 %v1892_v51, %v2532_v24  ;;  %v1281_v54 = vmul.f32 %v2538_v10, %v1242_v50  ;;  %v1508_v51 = vadd.s32 4294967200, %v2610_v29 }
 0x29b   : > { %v1894_v55 = vpop.f32.mrf.mxu1 }
 0x29c   : > { %v1243_v56 = vmax.f32 %v1197_v53, 0.0  ;;  %v1895_v57 = vadd.f32 %v1894_v55, %v1893_v52  ;;  %1339 = vadd.xlane.f32.xlu1 %v1281_v54  ;;  %v2648_v52 = vsub.s32 %v1466_v39, %v2454_v18  ;;  %v2651_v53 = vsub.s32 %v1473_v17, %v2454_v18 }
 0x29d   : > { %v1896_v58 = vpop.f32.mrf.mxu1 }
 0x29e   : > { %v1202_v60 = vadd.f32 %v1895_v57, %v2532_v24  ;;  %v1282_v61 = vmul.f32 %v2538_v10, %v1243_v56 }
 0x29f   : > { %v1897_v62 = vpop.f32.mrf.mxu1 }
 0x2a0   : > { %v1244_v63 = vmax.f32 %v1202_v60, 0.0  ;;  %v1898_v0 = vadd.f32 %v1897_v62, %v1896_v58  ;;  %1341 = vadd.xlane.f32.xlu1 %v1282_v61  ;;  %v2662_v60 = vsub.s32 %v1487_v46, %v2454_v18  ;;  %v1494_v61 = vadd.s32 4294967216, %v2610_v29 }
 0x2a1   : > { %v1899_v1 = vpop.f32.mrf.mxu1 }
 0x2a2   : > { %v1205_v3 = vadd.f32 %v1898_v0, %v2532_v24  ;;  %v1283_v4 = vmul.f32 %v2538_v10, %v1244_v63 }
 0x2a3   : > { %v1900_v5 = vpop.f32.mrf.mxu1 }
 0x2a4   : > { %v1245_v6 = vmax.f32 %v1205_v3, 0.0  ;;  %v1901_v7 = vadd.f32 %v1900_v5, %v1899_v1  ;;  %1343 = vadd.xlane.f32.xlu1 %v1283_v4  ;;  %v2670_v3 = vsub.s32 %v1508_v51, %v2454_v18 }
 0x2a5   : > { %v1902_v35 = vpop.f32.mrf.mxu1 }
 0x2a6   : > { %v1210_v8 = vadd.f32 %v1901_v7, %v2532_v24  ;;  %v1284_v23 = vmul.f32 %v2538_v10, %v1245_v6 }
 0x2a7   : > { %v1903_v9 = vpop.f32.mrf.mxu1 }
 0x2a8   : > { %v1246_v11 = vmax.f32 %v1210_v8, 0.0  ;;  %v1904_v12 = vadd.f32 %v1903_v9, %v1902_v35  ;;  %1345 = vadd.xlane.f32.xlu1 %v1284_v23  ;;  %v2680_v23 = vsub.s32 %v1494_v61, %v2454_v18  ;;  %v1515_v9 = vadd.s32 4294967192, %v2610_v29 }
 0x2aa   : > { %v1213_v13 = vadd.f32 %v1904_v12, %v2532_v24  ;;  %v1285_v15 = vmul.f32 %v2538_v10, %v1246_v11 }
 0x2ac   : > { %v1247_v16 = vmax.f32 %v1213_v13, 0.0  ;;  %1317 = vadd.xlane.f32.xlu1 %v1270_v14  ;;  %1347 = vadd.xlane.f32.xlu0 %v1285_v15 }
 0x2ae   : > { %v1286_v19 = vmul.f32 %v2538_v10, %v1247_v16  ;;  %v1445_v10 = vadd.s32 4294967272, %v2610_v29 }
 0x2b0   : > { %1349 = vadd.xlane.f32.xlu1 %v1286_v19  ;;  %v2634_v44 = vsub.s32 %v1445_v10, %v2454_v18 }
 0x2bd   : > { %v1288_v20 = vpop.xlane.xlu0 %1287 }
 0x2c1   : > { %v1290_v21 = vpop.xlane.xlu0 %1289 }
 0x2c5   : > { %v1292_v22 = vpop.xlane.xlu0 %1291 }
 0x2c9   : > { %v1294_v25 = vpop.xlane.xlu0 %1293 }
 0x2cd   : > { %v1296_v26 = vpop.xlane.xlu0 %1295 }
 0x2d1   : > { %v1298_v27 = vpop.xlane.xlu0 %1297 }
 0x2d5   : > { %v1300_v28 = vpop.xlane.xlu0 %1299 }
 0x2d9   : > { %v1302_v24 = vpop.xlane.xlu0 %1301 }
 0x2dd   : > { %v1304_v36 = vpop.xlane.xlu0 %1303 }
 0x2e1   : > { %v1306_v37 = vpop.xlane.xlu1 %1305 }
 0x2e5   : > { %v1308_v49 = vpop.xlane.xlu1 %1307  ;;  %v2644_v50 = vpop.permute.xlu0 %1358 }
 0x2e6   : > { %v1361_v54 = vadd.f32 %v2644_v50, %v1288_v20  ;;  %v1362_v55 = vadd.f32 %v2644_v50, %v1290_v21  ;;  %v1363_v56 = vadd.f32 %v2644_v50, %v1292_v22  ;;  %v1364_v57 = vadd.f32 %v2644_v50, %v1294_v25 }
 0x2e7   : > { %v1365_v58 = vadd.f32 %v2644_v50, %v1296_v26  ;;  %v1366_v1 = vadd.f32 %v2644_v50, %v1298_v27  ;;  %v1367_v4 = vadd.f32 %v2644_v50, %v1300_v28  ;;  %v1368_v7 = vadd.f32 %v2644_v50, %v1302_v24 }
 0x2e8   : > { %v1430_v62 = vrot.slane %v1361_v54, %v2625_v41  ;;  %v1435_v63 = vrot.slane %v1362_v55, %v2628_v42  ;;  %v1442_v0 = vrot.slane %v1363_v56, %v2631_v43  ;;  %v1449_v6 = vrot.slane %v1364_v57, %v2634_v44 }
 0x2e9   : > { %v1310_v2 = vpop.xlane.xlu1 %1309  ;;  %v1456_v38 = vrot.slane %v1365_v58, %v2639_v47  ;;  %v1369_v8 = vadd.f32 %v2644_v50, %v1304_v36  ;;  %v1463_v12 = vrot.slane %v1366_v1, %v2642_v48  ;;  %v1370_v13 = vadd.f32 %v2644_v50, %v1306_v37 }
 0x2ea   : > { %v1437_v5 = vsel %vm1436_vm0, %v1435_v63, %v1430_v62  ;;  %v1470_v16 = vrot.slane %v1367_v4, %v2648_v52  ;;  %v1371_v19 = vadd.f32 %v2644_v50, %v1308_v49  ;;  %v1372_v20 = vadd.f32 %v2644_v50, %v1310_v2 }
 0x2eb   : > { %v1444_v35 = vsel %vm1443_vm1, %v1442_v0, %v1437_v5  ;;  %v1477_v22 = vrot.slane %v1368_v7, %v2651_v53  ;;  %v1484_v27 = vrot.slane %v1369_v8, %v2659_v59  ;;  %v2696_v28 = vsub.s32 %v1515_v9, %v2454_v18 }
 0x2ec   : > { %v1451_v11 = vsel %vm1450_vm2, %v1449_v6, %v1444_v35  ;;  %v1491_v30 = vrot.slane %v1370_v13, %v2662_v60  ;;  %v1498_v10 = vrot.slane %v1371_v19, %v2680_v23  ;;  %v1505_v33 = vrot.slane %v1372_v20, %v2621_v40 }
 0x2ed   : > { %v1312_v14 = vpop.xlane.xlu1 %1311  ;;  %v1458_v15 = vsel %vm1457_vm3, %v1456_v38, %v1451_v11 }
 0x2ee   : > { %v1465_v21 = vsel %vm1464_vm4, %v1463_v12, %v1458_v15  ;;  %v1373_v25 = vadd.f32 %v2644_v50, %v1312_v14 }
 0x2ef   : > { %v1472_v26 = vsel %vm1471_vm5, %v1470_v16, %v1465_v21  ;;  %v1522_v21 = vadd.s32 4294967184, %v2610_v29 }
 0x2f0   : > { %v1479_v24 = vsel %vm1478_vm6, %v1477_v22, %v1472_v26  ;;  %v1512_v37 = vrot.slane %v1373_v25, %v2670_v3 }
 0x2f1   : > { %v1314_v31 = vpop.xlane.xlu1 %1313  ;;  %v1486_v32 = vsel %vm1485_vm7, %v1484_v27, %v1479_v24  ;;  %v1529_v27 = vadd.s32 4294967176, %v2610_v29 }
 0x2f2   : > { %v1374_v34 = vadd.f32 %v2644_v50, %v1314_v31  ;;  %v1493_v36 = vsel %vm1492_vm8, %v1491_v30, %v1486_v32 }
 0x2f3   : > { %v1500_v39 = vsel %vm1499_vm9, %v1498_v10, %v1493_v36 }
 0x2f4   : > { %v1519_v17 = vrot.slane %v1374_v34, %v2696_v28  ;;  %v1507_v45 = vsel %vm1506_vm10, %v1505_v33, %v1500_v39 }
 0x2f5   : > { %v1514_v46 = vsel %vm1513_vm11, %v1512_v37, %v1507_v45  ;;  %v1316_v51 = vpop.xlane.xlu1 %1315  ;;  %v1532_v37 = vsub.s32 %v1529_v27, %v2454_v18 }
 0x2f6   : > { %v2711_v49 = vsel %vm1520_vm12, %v1519_v17, %v1514_v46  ;;  %v1375_v34 = vadd.f32 %v2644_v50, %v1316_v51 }
 0x2fd   : > { %v1320_v54 = vpop.xlane.xlu1 %1319 }
 0x2fe   : > { %v1377_v7 = vadd.f32 %v2644_v50, %v1320_v54 }
 0x300   : > { %v1539_v14 = vrot.slane %v1377_v7, %v2625_v41 }
 0x301   : > { %v1322_v55 = vpop.xlane.xlu1 %1321 }
 0x302   : > { %v1378_v4 = vadd.f32 %v2644_v50, %v1322_v55 }
 0x304   : > { %v1543_v8 = vrot.slane %v1378_v4, %v2628_v42 }
 0x305   : > { %v1324_v56 = vpop.xlane.xlu1 %1323 }
 0x306   : > { %v1379_v5 = vadd.f32 %v2644_v50, %v1324_v56  ;;  %v1544_v42 = vsel %vm1436_vm0, %v1543_v8, %v1539_v14 }
 0x308   : > { %v1548_v11 = vrot.slane %v1379_v5, %v2631_v43 }
 0x309   : > { %v1326_v57 = vpop.xlane.xlu1 %1325 }
 0x30a   : > { %v1380_v35 = vadd.f32 %v2644_v50, %v1326_v57  ;;  %v1549_v25 = vsel %vm1443_vm1, %v1548_v11, %v1544_v42 }
 0x30c   : > { %v1553_v15 = vrot.slane %v1380_v35, %v2634_v44 }
 0x30d   : > { %v1328_v58 = vpop.xlane.xlu1 %1327 }
 0x30e   : > { %v1381_v38 = vadd.f32 %v2644_v50, %v1328_v58 }
 0x310   : > { %v1558_v19 = vrot.slane %v1381_v38, %v2639_v47  ;;  %v1554_v47 = vsel %vm1450_vm2, %v1553_v15, %v1549_v25 }
 0x311   : > { %v1330_v61 = vpop.xlane.xlu1 %1329 }
 0x312   : > { %v1382_v9 = vadd.f32 %v2644_v50, %v1330_v61 }
 0x314   : > { %v1563_v22 = vrot.slane %v1382_v9, %v2642_v48  ;;  %v1559_v48 = vsel %vm1457_vm3, %v1558_v19, %v1554_v47 }
 0x315   : > { %v1332_v62 = vpop.xlane.xlu1 %1331 }
 0x316   : > { %v1383_v12 = vadd.f32 %v2644_v50, %v1332_v62  ;;  %v1564_v10 = vsel %vm1464_vm4, %v1563_v22, %v1559_v48 }
 0x318   : > { %v1568_v41 = vrot.slane %v1383_v12, %v2648_v52  ;;  %v1525_v52 = vsub.s32 %v1522_v21, %v2454_v18 }
 0x319   : > { %v1334_v63 = vpop.xlane.xlu1 %1333 }
 0x31a   : > { %v1384_v16 = vadd.f32 %v2644_v50, %v1334_v63  ;;  %v1526_v55 = vrot.slane %v1375_v34, %v1525_v52 }
 0x31c   : > { %v1573_v24 = vrot.slane %v1384_v16, %v2651_v53  ;;  %v1569_v53 = vsel %vm1471_vm5, %v1568_v41, %v1564_v10 }
 0x31d   : > { %v1336_v0 = vpop.xlane.xlu1 %1335 }
 0x31e   : > { %v1385_v20 = vadd.f32 %v2644_v50, %v1336_v0  ;;  %v1574_v17 = vsel %vm1478_vm6, %v1573_v24, %v1569_v53  ;;  %v1528_v0 = vsel %vm1527_vm13, %v1526_v55, %v2711_v49 }
 0x320   : > { %v1578_v31 = vrot.slane %v1385_v20, %v2659_v59 }
 0x321   : > { %v1338_v1 = vpop.xlane.xlu1 %1337 }
 0x322   : > { %v1386_v43 = vadd.f32 %v2644_v50, %v1338_v1  ;;  %v1579_v51 = vsel %vm1485_vm7, %v1578_v31, %v1574_v17 }
 0x324   : > { %v1583_v33 = vrot.slane %v1386_v43, %v2662_v60 }
 0x325   : > { %v1340_v2 = vpop.xlane.xlu1 %1339 }
 0x326   : > { %v1387_v44 = vadd.f32 %v2644_v50, %v1340_v2 }
 0x328   : > { %v1588_v36 = vrot.slane %v1387_v44, %v2680_v23  ;;  %v1584_v23 = vsel %vm1492_vm8, %v1583_v33, %v1579_v51 }
 0x329   : > { %v1342_v6 = vpop.xlane.xlu1 %1341 }
 0x32a   : > { %v1388_v30 = vadd.f32 %v2644_v50, %v1342_v6  ;;  %v1589_v56 = vsel %vm1499_vm9, %v1588_v36, %v1584_v23 }
 0x32c   : > { %v1593_v45 = vrot.slane %v1388_v30, %v2621_v40 }
 0x32d   : > { %v1344_v13 = vpop.xlane.xlu1 %1343 }
 0x32e   : > { %v1389_v32 = vadd.f32 %v2644_v50, %v1344_v13  ;;  %v1594_v40 = vsel %vm1506_vm10, %v1593_v45, %v1589_v56 }
 0x330   : > { %v1598_v54 = vrot.slane %v1389_v32, %v2670_v3 }
 0x331   : > { %v1346_v26 = vpop.xlane.xlu1 %1345 }
 0x332   : > { %v1390_v29 = vadd.f32 %v2644_v50, %v1346_v26  ;;  %v1599_v63 = vsel %vm1513_vm11, %v1598_v54, %v1594_v40 }
 0x334   : > { %v1603_v18 = vrot.slane %v1390_v29, %v2696_v28 }
 0x335   : > { %v1318_v39 = vpop.xlane.xlu1 %1317  ;;  %v1348_v59 = vpop.xlane.xlu0 %1347 }
 0x336   : > { %v1376_v46 = vadd.f32 %v2644_v50, %v1318_v39  ;;  %v1391_v60 = vadd.f32 %v2644_v50, %v1348_v59  ;;  %v1604_v3 = vsel %vm1520_vm12, %v1603_v18, %v1599_v63 }
 0x338   : > { %v1608_v57 = vrot.slane %v1391_v60, %v1525_v52  ;;  %v1533_v61 = vrot.slane %v1376_v46, %v1532_v37 }
 0x339   : > { %v1350_v58 = vpop.xlane.xlu1 %1349 }
 0x33a   : > { %v1392_v62 = vadd.f32 %v2644_v50, %v1350_v58  ;;  %v1609_v1 = vsel %vm1527_vm13, %v1608_v57, %v1604_v3  ;;  %v1535_v2 = vsel %vm1534_vm14, %v1533_v61, %v1528_v0 }
 0x33c   : > { %v1613_v28 = vrot.slane %v1392_v62, %v1532_v37 }
 0x33e   : > { %v1614_v4 = vsel %vm1534_vm14, %v1613_v28, %v1609_v1 }
 0x33f   : > { %v1616_v50 = vsel %vm1615_vm15, %v1614_v4, %v1535_v2 }
 0x340   : > { %1618 = vst [vmem:[%s328_s11] sm:$0x3] %v1616_v50 }
 0x341   : > { %2137 = shalt.err (!%p2134_p9)
}
 0x342   : > { %s2138_s22 = scalar_lea.hbm %s2768_s18, 32  ;;  %s2142_s24 = scalar_lea.hbm %s2812_s7, 64 }
 0x343   : > { %p2139_p13 = scmp.ne.s32.totalorder %s2768_s18, %s2138_s22  ;;  %p2143_p4 = scmp.lt.s32.totalorder %s2768_s18, %s2812_s7 }
 0x344   : > { %p2144_p8 = scmp.lt.s32.totalorder %s2142_s24, %s2138_s22 }
 0x345   : > { %p2140_p5 = pnand %p2139_p13, %p2828_p10 }
 0x346   : > { %p2145_p7 = por %p2144_p8, %p2143_p4 }
 0x347   : > { %p2141_p0 = pneg %p2140_p5 }
 0x349   : > { %p2146_p11 = pnand %p2145_p7, %p2141_p0 }
 0x34b   : > { %2149 = shalt.err (!%p2146_p11)
}
 0x34c   : > { %1915 = dma.vmem_to_hbm [thread:$0]  (%p2828_p10), %s1634_s25, 32, %s2768_s18, %s1620_s6  }
 0x34d PF: > { %s1645_s11 = sand.u32 1, %s2180_s26   ;;  %p2829_p1 = scmp.ne.s32.totalorder %s2818_s9, 0 }
 0x34e   : > { %p2830_p2 = scmp.ge.s32.totalorder %s2192_s29, 2  ;;  %s1646_s12 = scalar_lea.sflag [#allocation5], %s1645_s11 }
 0x350   : > { %p1929_p6 = pnand %p2830_p2, %p2829_p1 }
 0x352   : > { %p1930_p12 = pneg %p1929_p6 }
 0x354   : > { %2175 = dma.done.wait (%p1930_p12), %s1646_s12, 32  }
 0x355   : > { %2177 = vsyncadd (%p1930_p12), %s1646_s12, 4294967264  ;;  %p23_p3 = scmp.ge.s32.totalorder %s2320_s30, 4   ;;  %s2831_s26 = smov %s2184_s27 }
 0x356   : > { %s2832_s27 = smov %s2188_s28  ;;  %s2833_s28 = smov %s2329_s14 }
 0x357   : > { %s2834_s29 = smov %s2320_s30  ;;  %25 = sbr.rel (!%p23_p3) target bundleno = 9 (0x9), region = 101 }
 0x35c   :  { %1651 = vsyncpa [#allocation4], 1 }
 0x35d   :  { %1653 = vsyncpa [#allocation4 + $0x1], 1 }
 0x35e   :  { %1654 = vsyncpa [#allocation7], 1 }
 0x35f   :  { %1655 = vsyncpa [#allocation5], 1 }
 0x360   :  { %1657 = vsyncpa [#allocation5 + $0x1], 1 }

</bundles_post_ra>
